<compile_context>
chip_gen: v7x
topology: tpu7x:2x2x1
jax: 0.10.0
libtpu: 0.0.40
codegen_flags: <defaults>
</compile_context>

<pallas_src>
import functools

import numpy as np
import jax
import jax.numpy as jnp
from jax.experimental import pallas as pl
from jax.experimental.pallas import tpu as pltpu

_LANE = 128
_CHUNK = 16                      # in-kernel row chunk (>= bf16 sublane tile of 16)
_EDGES = ((0, 1), (0, 2), (1, 2))


def _seq_edge_loss_kernel(p_ref, gl_ref, vm_ref, out_ref, *, weights):
    """p_ref : (N, 3 vertex-slots, 3 coords, tR, 128)  predicted vertex coords
       gl_ref: (3 edges, tR, 128)                      GT edge lengths (precomputed)
       vm_ref: (3 edges, tR, 128) bf16                 validity masks (0 in padding)
       out_ref:(3 edges, tR, 128) f32                  sum_n w_n*|len_n - gt_len| * mask
       weights: static tuple of pre-normalised gamma weights, len N."""
    n_pred = p_ref.shape[0]
    t_rows = out_ref.shape[1]
    lanes = out_ref.shape[2]
    f32 = jnp.float32

    # Strip-mine the tile in small row chunks: keeps the live set to a few
    # (16, 128) values (no vreg spills) while the grid tile stays large enough
    # to amortize per-step overhead and DMA issue latency.
    for r0 in range(0, t_rows, _CHUNK):
        rs = pl.ds(r0, _CHUNK)
        gl = [gl_ref[e, rs, :].astype(f32) for e in range(3)]
        acc = [jnp.zeros((_CHUNK, lanes), f32) for _ in range(3)]
        for n in range(n_pred):                      # N small & static: unrolled
            w = weights[n]
            for e, (va, vb) in enumerate(_EDGES):
                dx = (p_ref[n, va, 0, rs, :].astype(f32)
                      - p_ref[n, vb, 0, rs, :].astype(f32))
                dy = (p_ref[n, va, 1, rs, :].astype(f32)
                      - p_ref[n, vb, 1, rs, :].astype(f32))
                dz = (p_ref[n, va, 2, rs, :].astype(f32)
                      - p_ref[n, vb, 2, rs, :].astype(f32))
                length = jnp.sqrt(dx * dx + dy * dy + dz * dz)
                acc[e] = acc[e] + w * jnp.abs(length - gl[e])
        for e in range(3):
            # Masks are invariant over N -> applied once after the weighted sum.
            out_ref[e, rs, :] = acc[e] * vm_ref[e, rs, :].astype(f32)


def _round_up(x, m):
    return -(-x // m) * m


def _choose_tile_rows(rows_needed, n_pred, in_bytes,
                      budget_bytes=16 << 20, min_tiles=4, max_rows=512):
    """Tile rows from a conservative VMEM budget: counts Pallas double-buffering
    of inputs AND outputs (f32 out, bf16 masks), stays <= ~16 MiB so it is safe
    even on v7x (64 MiB physical / 32 MiB scoped).  Also capped so there are
    >= min_tiles grid steps when possible (both v7x TensorCores get work)."""
    per_row = _LANE * (2 * 9 * n_pred * in_bytes      # pred block
                       + 2 * 3 * in_bytes             # GT edge lengths
                       + 2 * 3 * 2                    # masks (bf16)
                       + 2 * 3 * 4)                   # output (f32)
    t_budget = max(_CHUNK, (budget_bytes // per_row) // _CHUNK * _CHUNK)
    t_split = _round_up(max(1, -(-rows_needed // min_tiles)), _CHUNK)
    return int(max(_CHUNK, min(t_budget, t_split, max_rows)))


def sequence_edge_loss(preds, gt, valid, face, gamma=0.8, transport_dtype=None):
    """preds: list of (B, V, 3); gt: (B, V, 3); valid: (B, V, 1) or int;
    face: (F, 3) int.  Returns (B, 3*F, 1), matching the PyTorch module.
    transport_dtype controls the HBM dtype of the kernel inputs (default: the
    dtype of preds); compute/accumulation inside the kernel is always f32."""
    n_pred = len(preds)
    B, V, _ = gt.shape
    face = np.asarray(face, dtype=np.int32)
    F = face.shape[0]

    if transport_dtype is None:
        transport_dtype = preds[0].dtype
    transport_dtype = np.dtype(transport_dtype)
    in_bytes = transport_dtype.itemsize

    # --- static tiling decisions (flattened, sublane-dense element axis) -----
    E = B * F
    rows_needed = -(-E // _LANE)
    t_rows = _choose_tile_rows(rows_needed, n_pred, in_bytes)
    rows = _round_up(rows_needed, t_rows)
    Ep = rows * _LANE
    n_tiles = rows // t_rows

    fa, fb, fc = face[:, 0], face[:, 1], face[:, 2]

    def to_planes(x):
        """(..., B, F) -> (..., rows, 128), zero-padded flat tail."""
        lead = x.shape[:-2]
        flat = x.reshape(lead + (E,))
        flat = jnp.pad(flat, [(0, 0)] * len(lead) + [(0, Ep - E)])
        return flat.reshape(lead + (rows, _LANE))

    # --- gathered predicted vertex coords: (N, 3 vslots, 3 coords, rows, 128) -
    P = jnp.stack(preds).astype(transport_dtype)       # (N, B, V, 3)
    G = P[:, :, face, :]                               # (N, B, F, 3, 3)
    G = jnp.transpose(G, (0, 3, 4, 1, 2))              # (N, 3, 3, B, F)
    pred_in = to_planes(G)

    # --- GT edge lengths, hoisted out of the kernel loop: (3, rows, 128) ------
    gtc = gt.astype(jnp.float32)

    def gt_edge_len(a_idx, b_idx):
        d = gtc[:, a_idx, :] - gtc[:, b_idx, :]         # (B, F, 3)
        return jnp.sqrt(jnp.sum(d * d, axis=-1))        # (B, F)

    gl = jnp.stack([gt_edge_len(fa, fb), gt_edge_len(fa, fc), gt_edge_len(fb, fc)], 0)
    gl_in = to_planes(gl.astype(transport_dtype))

    # --- validity masks (exact in bf16): (3, rows, 128) -----------------------
    if isinstance(valid, int):
        v = jnp.ones((B, V), jnp.float32)               # torch: masks == 1
    else:
        v = valid[..., 0].astype(jnp.float32)
    vm = jnp.stack([v[:, fa] * v[:, fb], v[:, fa] * v[:, fc], v[:, fb] * v[:, fc]], 0)
    vm_in = to_planes(vm).astype(jnp.bfloat16)

    # --- pre-normalised gamma weights (static Python constants) ---------------
    w_np = np.power(float(gamma), n_pred - 1 - np.arange(n_pred, dtype=np.float64))
    w_np = w_np / w_np.sum()
    weights = tuple(float(x) for x in w_np)

    out = pl.pallas_call(
        functools.partial(_seq_edge_loss_kernel, weights=weights),
        out_shape=jax.ShapeDtypeStruct((3, rows, _LANE), jnp.float32),
        grid=(n_tiles,),
        in_specs=[
            pl.BlockSpec((n_pred, 3, 3, t_rows, _LANE), lambda r: (0, 0, 0, r, 0)),
            pl.BlockSpec((3, t_rows, _LANE), lambda r: (0, r, 0)),
            pl.BlockSpec((3, t_rows, _LANE), lambda r: (0, r, 0)),
        ],
        out_specs=pl.BlockSpec((3, t_rows, _LANE), lambda r: (0, r, 0)),
        compiler_params=pltpu.CompilerParams(
            dimension_semantics=("parallel",),          # shard row tiles across TCs
            vmem_limit_bytes=32 << 20),
    )(pred_in, gl_in, vm_in)

    # out[e] is the flattened (B, F) plane for edge e; reshape/transpose only
    # touches the small 3-plane output stream (unavoidable while the module
    # returns the full per-edge loss tensor rather than a scalar reduction).
    out = out.reshape(3, Ep)[:, :E].reshape(3, B, F)
    out = jnp.transpose(out, (1, 0, 2))                 # (B, 3, F)
    return out.reshape(B, 3 * F, 1)


# ---------------- pure-JAX reference (mirrors the PyTorch code) ----------------
def _edge_loss_ref(co, cg, valid, face):
    i0, i1, i2 = face[:, 0], face[:, 1], face[:, 2]

    def d(c, a, b):
        return jnp.sqrt(jnp.sum((c[:, a, :] - c[:, b, :]) ** 2, 2, keepdims=True))

    d1o, d2o, d3o = d(co, i0, i1), d(co, i0, i2), d(co, i1, i2)
    d1g, d2g, d3g = d(cg, i0, i1), d(cg, i0, i2), d(cg, i1, i2)
    vm1 = valid[:, i0, :] * valid[:, i1, :]
    vm2 = valid[:, i0, :] * valid[:, i2, :]
    vm3 = valid[:, i1, :] * valid[:, i2, :]
    return jnp.concatenate(
        [jnp.abs(d1o - d1g) * vm1, jnp.abs(d2o - d2g) * vm2, jnp.abs(d3o - d3g) * vm3],
        axis=1)


def _sequence_edge_loss_ref(preds, gt, valid, face, gamma=0.8):
    n = len(preds)
    loss = 0.0
    weight = 0.0
    for i in range(n):
        w = gamma ** (n - i - 1)
        loss = loss + w * _edge_loss_ref(preds[i], gt, valid, face)
        weight += w
    return loss / weight


if __name__ == "__main__":
    key = jax.random.PRNGKey(0)
    B, V, N_PRED, F = 2, 16, 3, 8
    gamma = 0.8

    # Deterministic synthetic triangle faces (indices into V vertices).
    face = np.stack(
        [np.arange(F), (np.arange(F) + 3) % V, (np.arange(F) + 7) % V],
        axis=1).astype(np.int32)

    keys = jax.random.split(key, N_PRED + 2)
    preds = [jax.random.normal(keys[i], (B, V, 3), jnp.float32) for i in range(N_PRED)]
    gt = jax.random.normal(keys[N_PRED], (B, V, 3), jnp.float32)
    valid = (jax.random.uniform(keys[N_PRED + 1], (B, V, 1)) > 0.3).astype(jnp.float32)

    ref = _sequence_edge_loss_ref(preds, gt, valid, face, gamma=gamma)

    # Exact path: f32 HBM transport (matches the f32 reference to 1e-5).
    out = jax.block_until_ready(sequence_edge_loss(preds, gt, valid, face, gamma=gamma))
    assert out.shape == (B, 3 * F, 1), out.shape
    np.testing.assert_allclose(np.asarray(out), np.asarray(ref), rtol=1e-5, atol=1e-5)

    # Bandwidth-saving path: bf16 HBM transport, f32 in-kernel compute.
    out_bf16 = jax.block_until_ready(
        sequence_edge_loss(preds, gt, valid, face, gamma=gamma,
                           transport_dtype=jnp.bfloat16))
    np.testing.assert_allclose(np.asarray(out_bf16), np.asarray(ref),
                               rtol=5e-2, atol=5e-2)

    print("KERNEL_OK")
</pallas_src>

<mosaic_0001>
module attributes {stable_mosaic.version = 11 : i64} {
  func.func @_seq_edge_loss_kernel(%arg0: i32, %arg1: memref<3x3x3x16x128xf32, #tpu.memory_space<vmem>>, %arg2: memref<3x16x128xf32, #tpu.memory_space<vmem>>, %arg3: memref<3x16x128xbf16, #tpu.memory_space<vmem>>, %arg4: memref<3x16x128xf32, #tpu.memory_space<vmem>>) attributes {dimension_semantics = [#tpu.dimension_semantics<parallel>], iteration_bounds = array<i64: 1>, scalar_prefetch = 0 : i64, scratch_operands = 0 : i64, tpu.core_type = #tpu.core_type<tc>, window_params = [{transform_indices = @transform_0, window_bounds = array<i64: 3, 3, 3, 16, 128>}, {transform_indices = @transform_1, window_bounds = array<i64: 3, 16, 128>}, {transform_indices = @transform_2, window_bounds = array<i64: 3, 16, 128>}, {transform_indices = @transform_3, window_bounds = array<i64: 3, 16, 128>}]} {
    %c0 = arith.constant 0 : index
    %c0_0 = arith.constant 0 : index
    %c0_1 = arith.constant 0 : index
    %0 = vector.load %arg2[%c0, %c0_0, %c0_1] : memref<3x16x128xf32, #tpu.memory_space<vmem>>, vector<1x16x128xf32>
    %1 = vector.shape_cast %0 : vector<1x16x128xf32> to vector<16x128xf32>
    %c1 = arith.constant 1 : index
    %c0_2 = arith.constant 0 : index
    %c0_3 = arith.constant 0 : index
    %2 = vector.load %arg2[%c1, %c0_2, %c0_3] : memref<3x16x128xf32, #tpu.memory_space<vmem>>, vector<1x16x128xf32>
    %3 = vector.shape_cast %2 : vector<1x16x128xf32> to vector<16x128xf32>
    %c2 = arith.constant 2 : index
    %c0_4 = arith.constant 0 : index
    %c0_5 = arith.constant 0 : index
    %4 = vector.load %arg2[%c2, %c0_4, %c0_5] : memref<3x16x128xf32, #tpu.memory_space<vmem>>, vector<1x16x128xf32>
    %5 = vector.shape_cast %4 : vector<1x16x128xf32> to vector<16x128xf32>
    %cst = arith.constant 0.000000e+00 : f32
    %6 = vector.broadcast %cst : f32 to vector<16x128xf32>
    %cst_6 = arith.constant 0.000000e+00 : f32
    %7 = vector.broadcast %cst_6 : f32 to vector<16x128xf32>
    %cst_7 = arith.constant 0.000000e+00 : f32
    %8 = vector.broadcast %cst_7 : f32 to vector<16x128xf32>
    %c0_8 = arith.constant 0 : index
    %c0_9 = arith.constant 0 : index
    %c0_10 = arith.constant 0 : index
    %c0_11 = arith.constant 0 : index
    %c0_12 = arith.constant 0 : index
    %9 = vector.load %arg1[%c0_8, %c0_9, %c0_10, %c0_11, %c0_12] : memref<3x3x3x16x128xf32, #tpu.memory_space<vmem>>, vector<1x1x1x16x128xf32>
    %10 = vector.shape_cast %9 : vector<1x1x1x16x128xf32> to vector<16x128xf32>
    %c0_13 = arith.constant 0 : index
    %c1_14 = arith.constant 1 : index
    %c0_15 = arith.constant 0 : index
    %c0_16 = arith.constant 0 : index
    %c0_17 = arith.constant 0 : index
    %11 = vector.load %arg1[%c0_13, %c1_14, %c0_15, %c0_16, %c0_17] : memref<3x3x3x16x128xf32, #tpu.memory_space<vmem>>, vector<1x1x1x16x128xf32>
    %12 = vector.shape_cast %11 : vector<1x1x1x16x128xf32> to vector<16x128xf32>
    %13 = arith.subf %10, %12 : vector<16x128xf32>
    %c0_18 = arith.constant 0 : index
    %c0_19 = arith.constant 0 : index
    %c1_20 = arith.constant 1 : index
    %c0_21 = arith.constant 0 : index
    %c0_22 = arith.constant 0 : index
    %14 = vector.load %arg1[%c0_18, %c0_19, %c1_20, %c0_21, %c0_22] : memref<3x3x3x16x128xf32, #tpu.memory_space<vmem>>, vector<1x1x1x16x128xf32>
    %15 = vector.shape_cast %14 : vector<1x1x1x16x128xf32> to vector<16x128xf32>
    %c0_23 = arith.constant 0 : index
    %c1_24 = arith.constant 1 : index
    %c1_25 = arith.constant 1 : index
    %c0_26 = arith.constant 0 : index
    %c0_27 = arith.constant 0 : index
    %16 = vector.load %arg1[%c0_23, %c1_24, %c1_25, %c0_26, %c0_27] : memref<3x3x3x16x128xf32, #tpu.memory_space<vmem>>, vector<1x1x1x16x128xf32>
    %17 = vector.shape_cast %16 : vector<1x1x1x16x128xf32> to vector<16x128xf32>
    %18 = arith.subf %15, %17 : vector<16x128xf32>
    %c0_28 = arith.constant 0 : index
    %c0_29 = arith.constant 0 : index
    %c2_30 = arith.constant 2 : index
    %c0_31 = arith.constant 0 : index
    %c0_32 = arith.constant 0 : index
    %19 = vector.load %arg1[%c0_28, %c0_29, %c2_30, %c0_31, %c0_32] : memref<3x3x3x16x128xf32, #tpu.memory_space<vmem>>, vector<1x1x1x16x128xf32>
    %20 = vector.shape_cast %19 : vector<1x1x1x16x128xf32> to vector<16x128xf32>
    %c0_33 = arith.constant 0 : index
    %c1_34 = arith.constant 1 : index
    %c2_35 = arith.constant 2 : index
    %c0_36 = arith.constant 0 : index
    %c0_37 = arith.constant 0 : index
    %21 = vector.load %arg1[%c0_33, %c1_34, %c2_35, %c0_36, %c0_37] : memref<3x3x3x16x128xf32, #tpu.memory_space<vmem>>, vector<1x1x1x16x128xf32>
    %22 = vector.shape_cast %21 : vector<1x1x1x16x128xf32> to vector<16x128xf32>
    %23 = arith.subf %20, %22 : vector<16x128xf32>
    %24 = arith.mulf %13, %13 : vector<16x128xf32>
    %25 = arith.mulf %18, %18 : vector<16x128xf32>
    %26 = arith.addf %24, %25 : vector<16x128xf32>
    %27 = arith.mulf %23, %23 : vector<16x128xf32>
    %28 = arith.addf %26, %27 : vector<16x128xf32>
    %29 = math.sqrt %28 : vector<16x128xf32>
    %30 = arith.subf %29, %1 : vector<16x128xf32>
    %31 = math.absf %30 : vector<16x128xf32>
    %cst_38 = arith.constant 0.262295067 : f32
    %32 = vector.broadcast %cst_38 : f32 to vector<16x128xf32>
    %33 = arith.mulf %32, %31 : vector<16x128xf32>
    %34 = arith.addf %6, %33 : vector<16x128xf32>
    %c0_39 = arith.constant 0 : index
    %c0_40 = arith.constant 0 : index
    %c0_41 = arith.constant 0 : index
    %c0_42 = arith.constant 0 : index
    %c0_43 = arith.constant 0 : index
    %35 = vector.load %arg1[%c0_39, %c0_40, %c0_41, %c0_42, %c0_43] : memref<3x3x3x16x128xf32, #tpu.memory_space<vmem>>, vector<1x1x1x16x128xf32>
    %36 = vector.shape_cast %35 : vector<1x1x1x16x128xf32> to vector<16x128xf32>
    %c0_44 = arith.constant 0 : index
    %c2_45 = arith.constant 2 : index
    %c0_46 = arith.constant 0 : index
    %c0_47 = arith.constant 0 : index
    %c0_48 = arith.constant 0 : index
    %37 = vector.load %arg1[%c0_44, %c2_45, %c0_46, %c0_47, %c0_48] : memref<3x3x3x16x128xf32, #tpu.memory_space<vmem>>, vector<1x1x1x16x128xf32>
    %38 = vector.shape_cast %37 : vector<1x1x1x16x128xf32> to vector<16x128xf32>
    %39 = arith.subf %36, %38 : vector<16x128xf32>
    %c0_49 = arith.constant 0 : index
    %c0_50 = arith.constant 0 : index
    %c1_51 = arith.constant 1 : index
    %c0_52 = arith.constant 0 : index
    %c0_53 = arith.constant 0 : index
    %40 = vector.load %arg1[%c0_49, %c0_50, %c1_51, %c0_52, %c0_53] : memref<3x3x3x16x128xf32, #tpu.memory_space<vmem>>, vector<1x1x1x16x128xf32>
    %41 = vector.shape_cast %40 : vector<1x1x1x16x128xf32> to vector<16x128xf32>
    %c0_54 = arith.constant 0 : index
    %c2_55 = arith.constant 2 : index
    %c1_56 = arith.constant 1 : index
    %c0_57 = arith.constant 0 : index
    %c0_58 = arith.constant 0 : index
    %42 = vector.load %arg1[%c0_54, %c2_55, %c1_56, %c0_57, %c0_58] : memref<3x3x3x16x128xf32, #tpu.memory_space<vmem>>, vector<1x1x1x16x128xf32>
    %43 = vector.shape_cast %42 : vector<1x1x1x16x128xf32> to vector<16x128xf32>
    %44 = arith.subf %41, %43 : vector<16x128xf32>
    %c0_59 = arith.constant 0 : index
    %c0_60 = arith.constant 0 : index
    %c2_61 = arith.constant 2 : index
    %c0_62 = arith.constant 0 : index
    %c0_63 = arith.constant 0 : index
    %45 = vector.load %arg1[%c0_59, %c0_60, %c2_61, %c0_62, %c0_63] : memref<3x3x3x16x128xf32, #tpu.memory_space<vmem>>, vector<1x1x1x16x128xf32>
    %46 = vector.shape_cast %45 : vector<1x1x1x16x128xf32> to vector<16x128xf32>
    %c0_64 = arith.constant 0 : index
    %c2_65 = arith.constant 2 : index
    %c2_66 = arith.constant 2 : index
    %c0_67 = arith.constant 0 : index
    %c0_68 = arith.constant 0 : index
    %47 = vector.load %arg1[%c0_64, %c2_65, %c2_66, %c0_67, %c0_68] : memref<3x3x3x16x128xf32, #tpu.memory_space<vmem>>, vector<1x1x1x16x128xf32>
    %48 = vector.shape_cast %47 : vector<1x1x1x16x128xf32> to vector<16x128xf32>
    %49 = arith.subf %46, %48 : vector<16x128xf32>
    %50 = arith.mulf %39, %39 : vector<16x128xf32>
    %51 = arith.mulf %44, %44 : vector<16x128xf32>
    %52 = arith.addf %50, %51 : vector<16x128xf32>
    %53 = arith.mulf %49, %49 : vector<16x128xf32>
    %54 = arith.addf %52, %53 : vector<16x128xf32>
    %55 = math.sqrt %54 : vector<16x128xf32>
    %56 = arith.subf %55, %3 : vector<16x128xf32>
    %57 = math.absf %56 : vector<16x128xf32>
    %cst_69 = arith.constant 0.262295067 : f32
    %58 = vector.broadcast %cst_69 : f32 to vector<16x128xf32>
    %59 = arith.mulf %58, %57 : vector<16x128xf32>
    %60 = arith.addf %7, %59 : vector<16x128xf32>
    %c0_70 = arith.constant 0 : index
    %c1_71 = arith.constant 1 : index
    %c0_72 = arith.constant 0 : index
    %c0_73 = arith.constant 0 : index
    %c0_74 = arith.constant 0 : index
    %61 = vector.load %arg1[%c0_70, %c1_71, %c0_72, %c0_73, %c0_74] : memref<3x3x3x16x128xf32, #tpu.memory_space<vmem>>, vector<1x1x1x16x128xf32>
    %62 = vector.shape_cast %61 : vector<1x1x1x16x128xf32> to vector<16x128xf32>
    %c0_75 = arith.constant 0 : index
    %c2_76 = arith.constant 2 : index
    %c0_77 = arith.constant 0 : index
    %c0_78 = arith.constant 0 : index
    %c0_79 = arith.constant 0 : index
    %63 = vector.load %arg1[%c0_75, %c2_76, %c0_77, %c0_78, %c0_79] : memref<3x3x3x16x128xf32, #tpu.memory_space<vmem>>, vector<1x1x1x16x128xf32>
    %64 = vector.shape_cast %63 : vector<1x1x1x16x128xf32> to vector<16x128xf32>
    %65 = arith.subf %62, %64 : vector<16x128xf32>
    %c0_80 = arith.constant 0 : index
    %c1_81 = arith.constant 1 : index
    %c1_82 = arith.constant 1 : index
    %c0_83 = arith.constant 0 : index
    %c0_84 = arith.constant 0 : index
    %66 = vector.load %arg1[%c0_80, %c1_81, %c1_82, %c0_83, %c0_84] : memref<3x3x3x16x128xf32, #tpu.memory_space<vmem>>, vector<1x1x1x16x128xf32>
    %67 = vector.shape_cast %66 : vector<1x1x1x16x128xf32> to vector<16x128xf32>
    %c0_85 = arith.constant 0 : index
    %c2_86 = arith.constant 2 : index
    %c1_87 = arith.constant 1 : index
    %c0_88 = arith.constant 0 : index
    %c0_89 = arith.constant 0 : index
    %68 = vector.load %arg1[%c0_85, %c2_86, %c1_87, %c0_88, %c0_89] : memref<3x3x3x16x128xf32, #tpu.memory_space<vmem>>, vector<1x1x1x16x128xf32>
    %69 = vector.shape_cast %68 : vector<1x1x1x16x128xf32> to vector<16x128xf32>
    %70 = arith.subf %67, %69 : vector<16x128xf32>
    %c0_90 = arith.constant 0 : index
    %c1_91 = arith.constant 1 : index
    %c2_92 = arith.constant 2 : index
    %c0_93 = arith.constant 0 : index
    %c0_94 = arith.constant 0 : index
    %71 = vector.load %arg1[%c0_90, %c1_91, %c2_92, %c0_93, %c0_94] : memref<3x3x3x16x128xf32, #tpu.memory_space<vmem>>, vector<1x1x1x16x128xf32>
    %72 = vector.shape_cast %71 : vector<1x1x1x16x128xf32> to vector<16x128xf32>
    %c0_95 = arith.constant 0 : index
    %c2_96 = arith.constant 2 : index
    %c2_97 = arith.constant 2 : index
    %c0_98 = arith.constant 0 : index
    %c0_99 = arith.constant 0 : index
    %73 = vector.load %arg1[%c0_95, %c2_96, %c2_97, %c0_98, %c0_99] : memref<3x3x3x16x128xf32, #tpu.memory_space<vmem>>, vector<1x1x1x16x128xf32>
    %74 = vector.shape_cast %73 : vector<1x1x1x16x128xf32> to vector<16x128xf32>
    %75 = arith.subf %72, %74 : vector<16x128xf32>
    %76 = arith.mulf %65, %65 : vector<16x128xf32>
    %77 = arith.mulf %70, %70 : vector<16x128xf32>
    %78 = arith.addf %76, %77 : vector<16x128xf32>
    %79 = arith.mulf %75, %75 : vector<16x128xf32>
    %80 = arith.addf %78, %79 : vector<16x128xf32>
    %81 = math.sqrt %80 : vector<16x128xf32>
    %82 = arith.subf %81, %5 : vector<16x128xf32>
    %83 = math.absf %82 : vector<16x128xf32>
    %cst_100 = arith.constant 0.262295067 : f32
    %84 = vector.broadcast %cst_100 : f32 to vector<16x128xf32>
    %85 = arith.mulf %84, %83 : vector<16x128xf32>
    %86 = arith.addf %8, %85 : vector<16x128xf32>
    %c1_101 = arith.constant 1 : index
    %c0_102 = arith.constant 0 : index
    %c0_103 = arith.constant 0 : index
    %c0_104 = arith.constant 0 : index
    %c0_105 = arith.constant 0 : index
    %87 = vector.load %arg1[%c1_101, %c0_102, %c0_103, %c0_104, %c0_105] : memref<3x3x3x16x128xf32, #tpu.memory_space<vmem>>, vector<1x1x1x16x128xf32>
    %88 = vector.shape_cast %87 : vector<1x1x1x16x128xf32> to vector<16x128xf32>
    %c1_106 = arith.constant 1 : index
    %c1_107 = arith.constant 1 : index
    %c0_108 = arith.constant 0 : index
    %c0_109 = arith.constant 0 : index
    %c0_110 = arith.constant 0 : index
    %89 = vector.load %arg1[%c1_106, %c1_107, %c0_108, %c0_109, %c0_110] : memref<3x3x3x16x128xf32, #tpu.memory_space<vmem>>, vector<1x1x1x16x128xf32>
    %90 = vector.shape_cast %89 : vector<1x1x1x16x128xf32> to vector<16x128xf32>
    %91 = arith.subf %88, %90 : vector<16x128xf32>
    %c1_111 = arith.constant 1 : index
    %c0_112 = arith.constant 0 : index
    %c1_113 = arith.constant 1 : index
    %c0_114 = arith.constant 0 : index
    %c0_115 = arith.constant 0 : index
    %92 = vector.load %arg1[%c1_111, %c0_112, %c1_113, %c0_114, %c0_115] : memref<3x3x3x16x128xf32, #tpu.memory_space<vmem>>, vector<1x1x1x16x128xf32>
    %93 = vector.shape_cast %92 : vector<1x1x1x16x128xf32> to vector<16x128xf32>
    %c1_116 = arith.constant 1 : index
    %c1_117 = arith.constant 1 : index
    %c1_118 = arith.constant 1 : index
    %c0_119 = arith.constant 0 : index
    %c0_120 = arith.constant 0 : index
    %94 = vector.load %arg1[%c1_116, %c1_117, %c1_118, %c0_119, %c0_120] : memref<3x3x3x16x128xf32, #tpu.memory_space<vmem>>, vector<1x1x1x16x128xf32>
    %95 = vector.shape_cast %94 : vector<1x1x1x16x128xf32> to vector<16x128xf32>
    %96 = arith.subf %93, %95 : vector<16x128xf32>
    %c1_121 = arith.constant 1 : index
    %c0_122 = arith.constant 0 : index
    %c2_123 = arith.constant 2 : index
    %c0_124 = arith.constant 0 : index
    %c0_125 = arith.constant 0 : index
    %97 = vector.load %arg1[%c1_121, %c0_122, %c2_123, %c0_124, %c0_125] : memref<3x3x3x16x128xf32, #tpu.memory_space<vmem>>, vector<1x1x1x16x128xf32>
    %98 = vector.shape_cast %97 : vector<1x1x1x16x128xf32> to vector<16x128xf32>
    %c1_126 = arith.constant 1 : index
    %c1_127 = arith.constant 1 : index
    %c2_128 = arith.constant 2 : index
    %c0_129 = arith.constant 0 : index
    %c0_130 = arith.constant 0 : index
    %99 = vector.load %arg1[%c1_126, %c1_127, %c2_128, %c0_129, %c0_130] : memref<3x3x3x16x128xf32, #tpu.memory_space<vmem>>, vector<1x1x1x16x128xf32>
    %100 = vector.shape_cast %99 : vector<1x1x1x16x128xf32> to vector<16x128xf32>
    %101 = arith.subf %98, %100 : vector<16x128xf32>
    %102 = arith.mulf %91, %91 : vector<16x128xf32>
    %103 = arith.mulf %96, %96 : vector<16x128xf32>
    %104 = arith.addf %102, %103 : vector<16x128xf32>
    %105 = arith.mulf %101, %101 : vector<16x128xf32>
    %106 = arith.addf %104, %105 : vector<16x128xf32>
    %107 = math.sqrt %106 : vector<16x128xf32>
    %108 = arith.subf %107, %1 : vector<16x128xf32>
    %109 = math.absf %108 : vector<16x128xf32>
    %cst_131 = arith.constant 0.327868849 : f32
    %110 = vector.broadcast %cst_131 : f32 to vector<16x128xf32>
    %111 = arith.mulf %110, %109 : vector<16x128xf32>
    %112 = arith.addf %34, %111 : vector<16x128xf32>
    %c1_132 = arith.constant 1 : index
    %c0_133 = arith.constant 0 : index
    %c0_134 = arith.constant 0 : index
    %c0_135 = arith.constant 0 : index
    %c0_136 = arith.constant 0 : index
    %113 = vector.load %arg1[%c1_132, %c0_133, %c0_134, %c0_135, %c0_136] : memref<3x3x3x16x128xf32, #tpu.memory_space<vmem>>, vector<1x1x1x16x128xf32>
    %114 = vector.shape_cast %113 : vector<1x1x1x16x128xf32> to vector<16x128xf32>
    %c1_137 = arith.constant 1 : index
    %c2_138 = arith.constant 2 : index
    %c0_139 = arith.constant 0 : index
    %c0_140 = arith.constant 0 : index
    %c0_141 = arith.constant 0 : index
    %115 = vector.load %arg1[%c1_137, %c2_138, %c0_139, %c0_140, %c0_141] : memref<3x3x3x16x128xf32, #tpu.memory_space<vmem>>, vector<1x1x1x16x128xf32>
    %116 = vector.shape_cast %115 : vector<1x1x1x16x128xf32> to vector<16x128xf32>
    %117 = arith.subf %114, %116 : vector<16x128xf32>
    %c1_142 = arith.constant 1 : index
    %c0_143 = arith.constant 0 : index
    %c1_144 = arith.constant 1 : index
    %c0_145 = arith.constant 0 : index
    %c0_146 = arith.constant 0 : index
    %118 = vector.load %arg1[%c1_142, %c0_143, %c1_144, %c0_145, %c0_146] : memref<3x3x3x16x128xf32, #tpu.memory_space<vmem>>, vector<1x1x1x16x128xf32>
    %119 = vector.shape_cast %118 : vector<1x1x1x16x128xf32> to vector<16x128xf32>
    %c1_147 = arith.constant 1 : index
    %c2_148 = arith.constant 2 : index
    %c1_149 = arith.constant 1 : index
    %c0_150 = arith.constant 0 : index
    %c0_151 = arith.constant 0 : index
    %120 = vector.load %arg1[%c1_147, %c2_148, %c1_149, %c0_150, %c0_151] : memref<3x3x3x16x128xf32, #tpu.memory_space<vmem>>, vector<1x1x1x16x128xf32>
    %121 = vector.shape_cast %120 : vector<1x1x1x16x128xf32> to vector<16x128xf32>
    %122 = arith.subf %119, %121 : vector<16x128xf32>
    %c1_152 = arith.constant 1 : index
    %c0_153 = arith.constant 0 : index
    %c2_154 = arith.constant 2 : index
    %c0_155 = arith.constant 0 : index
    %c0_156 = arith.constant 0 : index
    %123 = vector.load %arg1[%c1_152, %c0_153, %c2_154, %c0_155, %c0_156] : memref<3x3x3x16x128xf32, #tpu.memory_space<vmem>>, vector<1x1x1x16x128xf32>
    %124 = vector.shape_cast %123 : vector<1x1x1x16x128xf32> to vector<16x128xf32>
    %c1_157 = arith.constant 1 : index
    %c2_158 = arith.constant 2 : index
    %c2_159 = arith.constant 2 : index
    %c0_160 = arith.constant 0 : index
    %c0_161 = arith.constant 0 : index
    %125 = vector.load %arg1[%c1_157, %c2_158, %c2_159, %c0_160, %c0_161] : memref<3x3x3x16x128xf32, #tpu.memory_space<vmem>>, vector<1x1x1x16x128xf32>
    %126 = vector.shape_cast %125 : vector<1x1x1x16x128xf32> to vector<16x128xf32>
    %127 = arith.subf %124, %126 : vector<16x128xf32>
    %128 = arith.mulf %117, %117 : vector<16x128xf32>
    %129 = arith.mulf %122, %122 : vector<16x128xf32>
    %130 = arith.addf %128, %129 : vector<16x128xf32>
    %131 = arith.mulf %127, %127 : vector<16x128xf32>
    %132 = arith.addf %130, %131 : vector<16x128xf32>
    %133 = math.sqrt %132 : vector<16x128xf32>
    %134 = arith.subf %133, %3 : vector<16x128xf32>
    %135 = math.absf %134 : vector<16x128xf32>
    %cst_162 = arith.constant 0.327868849 : f32
    %136 = vector.broadcast %cst_162 : f32 to vector<16x128xf32>
    %137 = arith.mulf %136, %135 : vector<16x128xf32>
    %138 = arith.addf %60, %137 : vector<16x128xf32>
    %c1_163 = arith.constant 1 : index
    %c1_164 = arith.constant 1 : index
    %c0_165 = arith.constant 0 : index
    %c0_166 = arith.constant 0 : index
    %c0_167 = arith.constant 0 : index
    %139 = vector.load %arg1[%c1_163, %c1_164, %c0_165, %c0_166, %c0_167] : memref<3x3x3x16x128xf32, #tpu.memory_space<vmem>>, vector<1x1x1x16x128xf32>
    %140 = vector.shape_cast %139 : vector<1x1x1x16x128xf32> to vector<16x128xf32>
    %c1_168 = arith.constant 1 : index
    %c2_169 = arith.constant 2 : index
    %c0_170 = arith.constant 0 : index
    %c0_171 = arith.constant 0 : index
    %c0_172 = arith.constant 0 : index
    %141 = vector.load %arg1[%c1_168, %c2_169, %c0_170, %c0_171, %c0_172] : memref<3x3x3x16x128xf32, #tpu.memory_space<vmem>>, vector<1x1x1x16x128xf32>
    %142 = vector.shape_cast %141 : vector<1x1x1x16x128xf32> to vector<16x128xf32>
    %143 = arith.subf %140, %142 : vector<16x128xf32>
    %c1_173 = arith.constant 1 : index
    %c1_174 = arith.constant 1 : index
    %c1_175 = arith.constant 1 : index
    %c0_176 = arith.constant 0 : index
    %c0_177 = arith.constant 0 : index
    %144 = vector.load %arg1[%c1_173, %c1_174, %c1_175, %c0_176, %c0_177] : memref<3x3x3x16x128xf32, #tpu.memory_space<vmem>>, vector<1x1x1x16x128xf32>
    %145 = vector.shape_cast %144 : vector<1x1x1x16x128xf32> to vector<16x128xf32>
    %c1_178 = arith.constant 1 : index
    %c2_179 = arith.constant 2 : index
    %c1_180 = arith.constant 1 : index
    %c0_181 = arith.constant 0 : index
    %c0_182 = arith.constant 0 : index
    %146 = vector.load %arg1[%c1_178, %c2_179, %c1_180, %c0_181, %c0_182] : memref<3x3x3x16x128xf32, #tpu.memory_space<vmem>>, vector<1x1x1x16x128xf32>
    %147 = vector.shape_cast %146 : vector<1x1x1x16x128xf32> to vector<16x128xf32>
    %148 = arith.subf %145, %147 : vector<16x128xf32>
    %c1_183 = arith.constant 1 : index
    %c1_184 = arith.constant 1 : index
    %c2_185 = arith.constant 2 : index
    %c0_186 = arith.constant 0 : index
    %c0_187 = arith.constant 0 : index
    %149 = vector.load %arg1[%c1_183, %c1_184, %c2_185, %c0_186, %c0_187] : memref<3x3x3x16x128xf32, #tpu.memory_space<vmem>>, vector<1x1x1x16x128xf32>
    %150 = vector.shape_cast %149 : vector<1x1x1x16x128xf32> to vector<16x128xf32>
    %c1_188 = arith.constant 1 : index
    %c2_189 = arith.constant 2 : index
    %c2_190 = arith.constant 2 : index
    %c0_191 = arith.constant 0 : index
    %c0_192 = arith.constant 0 : index
    %151 = vector.load %arg1[%c1_188, %c2_189, %c2_190, %c0_191, %c0_192] : memref<3x3x3x16x128xf32, #tpu.memory_space<vmem>>, vector<1x1x1x16x128xf32>
    %152 = vector.shape_cast %151 : vector<1x1x1x16x128xf32> to vector<16x128xf32>
    %153 = arith.subf %150, %152 : vector<16x128xf32>
    %154 = arith.mulf %143, %143 : vector<16x128xf32>
    %155 = arith.mulf %148, %148 : vector<16x128xf32>
    %156 = arith.addf %154, %155 : vector<16x128xf32>
    %157 = arith.mulf %153, %153 : vector<16x128xf32>
    %158 = arith.addf %156, %157 : vector<16x128xf32>
    %159 = math.sqrt %158 : vector<16x128xf32>
    %160 = arith.subf %159, %5 : vector<16x128xf32>
    %161 = math.absf %160 : vector<16x128xf32>
    %cst_193 = arith.constant 0.327868849 : f32
    %162 = vector.broadcast %cst_193 : f32 to vector<16x128xf32>
    %163 = arith.mulf %162, %161 : vector<16x128xf32>
    %164 = arith.addf %86, %163 : vector<16x128xf32>
    %c2_194 = arith.constant 2 : index
    %c0_195 = arith.constant 0 : index
    %c0_196 = arith.constant 0 : index
    %c0_197 = arith.constant 0 : index
    %c0_198 = arith.constant 0 : index
    %165 = vector.load %arg1[%c2_194, %c0_195, %c0_196, %c0_197, %c0_198] : memref<3x3x3x16x128xf32, #tpu.memory_space<vmem>>, vector<1x1x1x16x128xf32>
    %166 = vector.shape_cast %165 : vector<1x1x1x16x128xf32> to vector<16x128xf32>
    %c2_199 = arith.constant 2 : index
    %c1_200 = arith.constant 1 : index
    %c0_201 = arith.constant 0 : index
    %c0_202 = arith.constant 0 : index
    %c0_203 = arith.constant 0 : index
    %167 = vector.load %arg1[%c2_199, %c1_200, %c0_201, %c0_202, %c0_203] : memref<3x3x3x16x128xf32, #tpu.memory_space<vmem>>, vector<1x1x1x16x128xf32>
    %168 = vector.shape_cast %167 : vector<1x1x1x16x128xf32> to vector<16x128xf32>
    %169 = arith.subf %166, %168 : vector<16x128xf32>
    %c2_204 = arith.constant 2 : index
    %c0_205 = arith.constant 0 : index
    %c1_206 = arith.constant 1 : index
    %c0_207 = arith.constant 0 : index
    %c0_208 = arith.constant 0 : index
    %170 = vector.load %arg1[%c2_204, %c0_205, %c1_206, %c0_207, %c0_208] : memref<3x3x3x16x128xf32, #tpu.memory_space<vmem>>, vector<1x1x1x16x128xf32>
    %171 = vector.shape_cast %170 : vector<1x1x1x16x128xf32> to vector<16x128xf32>
    %c2_209 = arith.constant 2 : index
    %c1_210 = arith.constant 1 : index
    %c1_211 = arith.constant 1 : index
    %c0_212 = arith.constant 0 : index
    %c0_213 = arith.constant 0 : index
    %172 = vector.load %arg1[%c2_209, %c1_210, %c1_211, %c0_212, %c0_213] : memref<3x3x3x16x128xf32, #tpu.memory_space<vmem>>, vector<1x1x1x16x128xf32>
    %173 = vector.shape_cast %172 : vector<1x1x1x16x128xf32> to vector<16x128xf32>
    %174 = arith.subf %171, %173 : vector<16x128xf32>
    %c2_214 = arith.constant 2 : index
    %c0_215 = arith.constant 0 : index
    %c2_216 = arith.constant 2 : index
    %c0_217 = arith.constant 0 : index
    %c0_218 = arith.constant 0 : index
    %175 = vector.load %arg1[%c2_214, %c0_215, %c2_216, %c0_217, %c0_218] : memref<3x3x3x16x128xf32, #tpu.memory_space<vmem>>, vector<1x1x1x16x128xf32>
    %176 = vector.shape_cast %175 : vector<1x1x1x16x128xf32> to vector<16x128xf32>
    %c2_219 = arith.constant 2 : index
    %c1_220 = arith.constant 1 : index
    %c2_221 = arith.constant 2 : index
    %c0_222 = arith.constant 0 : index
    %c0_223 = arith.constant 0 : index
    %177 = vector.load %arg1[%c2_219, %c1_220, %c2_221, %c0_222, %c0_223] : memref<3x3x3x16x128xf32, #tpu.memory_space<vmem>>, vector<1x1x1x16x128xf32>
    %178 = vector.shape_cast %177 : vector<1x1x1x16x128xf32> to vector<16x128xf32>
    %179 = arith.subf %176, %178 : vector<16x128xf32>
    %180 = arith.mulf %169, %169 : vector<16x128xf32>
    %181 = arith.mulf %174, %174 : vector<16x128xf32>
    %182 = arith.addf %180, %181 : vector<16x128xf32>
    %183 = arith.mulf %179, %179 : vector<16x128xf32>
    %184 = arith.addf %182, %183 : vector<16x128xf32>
    %185 = math.sqrt %184 : vector<16x128xf32>
    %186 = arith.subf %185, %1 : vector<16x128xf32>
    %187 = math.absf %186 : vector<16x128xf32>
    %cst_224 = arith.constant 0.409836054 : f32
    %188 = vector.broadcast %cst_224 : f32 to vector<16x128xf32>
    %189 = arith.mulf %188, %187 : vector<16x128xf32>
    %190 = arith.addf %112, %189 : vector<16x128xf32>
    %c2_225 = arith.constant 2 : index
    %c0_226 = arith.constant 0 : index
    %c0_227 = arith.constant 0 : index
    %c0_228 = arith.constant 0 : index
    %c0_229 = arith.constant 0 : index
    %191 = vector.load %arg1[%c2_225, %c0_226, %c0_227, %c0_228, %c0_229] : memref<3x3x3x16x128xf32, #tpu.memory_space<vmem>>, vector<1x1x1x16x128xf32>
    %192 = vector.shape_cast %191 : vector<1x1x1x16x128xf32> to vector<16x128xf32>
    %c2_230 = arith.constant 2 : index
    %c2_231 = arith.constant 2 : index
    %c0_232 = arith.constant 0 : index
    %c0_233 = arith.constant 0 : index
    %c0_234 = arith.constant 0 : index
    %193 = vector.load %arg1[%c2_230, %c2_231, %c0_232, %c0_233, %c0_234] : memref<3x3x3x16x128xf32, #tpu.memory_space<vmem>>, vector<1x1x1x16x128xf32>
    %194 = vector.shape_cast %193 : vector<1x1x1x16x128xf32> to vector<16x128xf32>
    %195 = arith.subf %192, %194 : vector<16x128xf32>
    %c2_235 = arith.constant 2 : index
    %c0_236 = arith.constant 0 : index
    %c1_237 = arith.constant 1 : index
    %c0_238 = arith.constant 0 : index
    %c0_239 = arith.constant 0 : index
    %196 = vector.load %arg1[%c2_235, %c0_236, %c1_237, %c0_238, %c0_239] : memref<3x3x3x16x128xf32, #tpu.memory_space<vmem>>, vector<1x1x1x16x128xf32>
    %197 = vector.shape_cast %196 : vector<1x1x1x16x128xf32> to vector<16x128xf32>
    %c2_240 = arith.constant 2 : index
    %c2_241 = arith.constant 2 : index
    %c1_242 = arith.constant 1 : index
    %c0_243 = arith.constant 0 : index
    %c0_244 = arith.constant 0 : index
    %198 = vector.load %arg1[%c2_240, %c2_241, %c1_242, %c0_243, %c0_244] : memref<3x3x3x16x128xf32, #tpu.memory_space<vmem>>, vector<1x1x1x16x128xf32>
    %199 = vector.shape_cast %198 : vector<1x1x1x16x128xf32> to vector<16x128xf32>
    %200 = arith.subf %197, %199 : vector<16x128xf32>
    %c2_245 = arith.constant 2 : index
    %c0_246 = arith.constant 0 : index
    %c2_247 = arith.constant 2 : index
    %c0_248 = arith.constant 0 : index
    %c0_249 = arith.constant 0 : index
    %201 = vector.load %arg1[%c2_245, %c0_246, %c2_247, %c0_248, %c0_249] : memref<3x3x3x16x128xf32, #tpu.memory_space<vmem>>, vector<1x1x1x16x128xf32>
    %202 = vector.shape_cast %201 : vector<1x1x1x16x128xf32> to vector<16x128xf32>
    %c2_250 = arith.constant 2 : index
    %c2_251 = arith.constant 2 : index
    %c2_252 = arith.constant 2 : index
    %c0_253 = arith.constant 0 : index
    %c0_254 = arith.constant 0 : index
    %203 = vector.load %arg1[%c2_250, %c2_251, %c2_252, %c0_253, %c0_254] : memref<3x3x3x16x128xf32, #tpu.memory_space<vmem>>, vector<1x1x1x16x128xf32>
    %204 = vector.shape_cast %203 : vector<1x1x1x16x128xf32> to vector<16x128xf32>
    %205 = arith.subf %202, %204 : vector<16x128xf32>
    %206 = arith.mulf %195, %195 : vector<16x128xf32>
    %207 = arith.mulf %200, %200 : vector<16x128xf32>
    %208 = arith.addf %206, %207 : vector<16x128xf32>
    %209 = arith.mulf %205, %205 : vector<16x128xf32>
    %210 = arith.addf %208, %209 : vector<16x128xf32>
    %211 = math.sqrt %210 : vector<16x128xf32>
    %212 = arith.subf %211, %3 : vector<16x128xf32>
    %213 = math.absf %212 : vector<16x128xf32>
    %cst_255 = arith.constant 0.409836054 : f32
    %214 = vector.broadcast %cst_255 : f32 to vector<16x128xf32>
    %215 = arith.mulf %214, %213 : vector<16x128xf32>
    %216 = arith.addf %138, %215 : vector<16x128xf32>
    %c2_256 = arith.constant 2 : index
    %c1_257 = arith.constant 1 : index
    %c0_258 = arith.constant 0 : index
    %c0_259 = arith.constant 0 : index
    %c0_260 = arith.constant 0 : index
    %217 = vector.load %arg1[%c2_256, %c1_257, %c0_258, %c0_259, %c0_260] : memref<3x3x3x16x128xf32, #tpu.memory_space<vmem>>, vector<1x1x1x16x128xf32>
    %218 = vector.shape_cast %217 : vector<1x1x1x16x128xf32> to vector<16x128xf32>
    %c2_261 = arith.constant 2 : index
    %c2_262 = arith.constant 2 : index
    %c0_263 = arith.constant 0 : index
    %c0_264 = arith.constant 0 : index
    %c0_265 = arith.constant 0 : index
    %219 = vector.load %arg1[%c2_261, %c2_262, %c0_263, %c0_264, %c0_265] : memref<3x3x3x16x128xf32, #tpu.memory_space<vmem>>, vector<1x1x1x16x128xf32>
    %220 = vector.shape_cast %219 : vector<1x1x1x16x128xf32> to vector<16x128xf32>
    %221 = arith.subf %218, %220 : vector<16x128xf32>
    %c2_266 = arith.constant 2 : index
    %c1_267 = arith.constant 1 : index
    %c1_268 = arith.constant 1 : index
    %c0_269 = arith.constant 0 : index
    %c0_270 = arith.constant 0 : index
    %222 = vector.load %arg1[%c2_266, %c1_267, %c1_268, %c0_269, %c0_270] : memref<3x3x3x16x128xf32, #tpu.memory_space<vmem>>, vector<1x1x1x16x128xf32>
    %223 = vector.shape_cast %222 : vector<1x1x1x16x128xf32> to vector<16x128xf32>
    %c2_271 = arith.constant 2 : index
    %c2_272 = arith.constant 2 : index
    %c1_273 = arith.constant 1 : index
    %c0_274 = arith.constant 0 : index
    %c0_275 = arith.constant 0 : index
    %224 = vector.load %arg1[%c2_271, %c2_272, %c1_273, %c0_274, %c0_275] : memref<3x3x3x16x128xf32, #tpu.memory_space<vmem>>, vector<1x1x1x16x128xf32>
    %225 = vector.shape_cast %224 : vector<1x1x1x16x128xf32> to vector<16x128xf32>
    %226 = arith.subf %223, %225 : vector<16x128xf32>
    %c2_276 = arith.constant 2 : index
    %c1_277 = arith.constant 1 : index
    %c2_278 = arith.constant 2 : index
    %c0_279 = arith.constant 0 : index
    %c0_280 = arith.constant 0 : index
    %227 = vector.load %arg1[%c2_276, %c1_277, %c2_278, %c0_279, %c0_280] : memref<3x3x3x16x128xf32, #tpu.memory_space<vmem>>, vector<1x1x1x16x128xf32>
    %228 = vector.shape_cast %227 : vector<1x1x1x16x128xf32> to vector<16x128xf32>
    %c2_281 = arith.constant 2 : index
    %c2_282 = arith.constant 2 : index
    %c2_283 = arith.constant 2 : index
    %c0_284 = arith.constant 0 : index
    %c0_285 = arith.constant 0 : index
    %229 = vector.load %arg1[%c2_281, %c2_282, %c2_283, %c0_284, %c0_285] : memref<3x3x3x16x128xf32, #tpu.memory_space<vmem>>, vector<1x1x1x16x128xf32>
    %230 = vector.shape_cast %229 : vector<1x1x1x16x128xf32> to vector<16x128xf32>
    %231 = arith.subf %228, %230 : vector<16x128xf32>
    %232 = arith.mulf %221, %221 : vector<16x128xf32>
    %233 = arith.mulf %226, %226 : vector<16x128xf32>
    %234 = arith.addf %232, %233 : vector<16x128xf32>
    %235 = arith.mulf %231, %231 : vector<16x128xf32>
    %236 = arith.addf %234, %235 : vector<16x128xf32>
    %237 = math.sqrt %236 : vector<16x128xf32>
    %238 = arith.subf %237, %5 : vector<16x128xf32>
    %239 = math.absf %238 : vector<16x128xf32>
    %cst_286 = arith.constant 0.409836054 : f32
    %240 = vector.broadcast %cst_286 : f32 to vector<16x128xf32>
    %241 = arith.mulf %240, %239 : vector<16x128xf32>
    %242 = arith.addf %164, %241 : vector<16x128xf32>
    %c0_287 = arith.constant 0 : index
    %c0_288 = arith.constant 0 : index
    %c0_289 = arith.constant 0 : index
    %243 = vector.load %arg3[%c0_287, %c0_288, %c0_289] : memref<3x16x128xbf16, #tpu.memory_space<vmem>>, vector<1x16x128xbf16>
    %244 = vector.shape_cast %243 : vector<1x16x128xbf16> to vector<16x128xbf16>
    %245 = arith.extf %244 : vector<16x128xbf16> to vector<16x128xf32>
    %246 = arith.mulf %190, %245 : vector<16x128xf32>
    %c0_290 = arith.constant 0 : index
    %c0_291 = arith.constant 0 : index
    %c0_292 = arith.constant 0 : index
    %247 = vector.load %arg4[%c0_290, %c0_291, %c0_292] : memref<3x16x128xf32, #tpu.memory_space<vmem>>, vector<1x16x128xf32>
    %248 = vector.shape_cast %247 : vector<1x16x128xf32> to vector<16x128xf32>
    %249 = vector.shape_cast %246 : vector<16x128xf32> to vector<1x16x128xf32>
    tpu.vector_store %arg4[%c0_290, %c0_291, %c0_292], %249 {strides = array<i32>} : memref<3x16x128xf32, #tpu.memory_space<vmem>>, vector<1x16x128xf32>,
    %c1_293 = arith.constant 1 : index
    %c0_294 = arith.constant 0 : index
    %c0_295 = arith.constant 0 : index
    %250 = vector.load %arg3[%c1_293, %c0_294, %c0_295] : memref<3x16x128xbf16, #tpu.memory_space<vmem>>, vector<1x16x128xbf16>
    %251 = vector.shape_cast %250 : vector<1x16x128xbf16> to vector<16x128xbf16>
    %252 = arith.extf %251 : vector<16x128xbf16> to vector<16x128xf32>
    %253 = arith.mulf %216, %252 : vector<16x128xf32>
    %c1_296 = arith.constant 1 : index
    %c0_297 = arith.constant 0 : index
    %c0_298 = arith.constant 0 : index
    %254 = vector.load %arg4[%c1_296, %c0_297, %c0_298] : memref<3x16x128xf32, #tpu.memory_space<vmem>>, vector<1x16x128xf32>
    %255 = vector.shape_cast %254 : vector<1x16x128xf32> to vector<16x128xf32>
    %256 = vector.shape_cast %253 : vector<16x128xf32> to vector<1x16x128xf32>
    tpu.vector_store %arg4[%c1_296, %c0_297, %c0_298], %256 {strides = array<i32>} : memref<3x16x128xf32, #tpu.memory_space<vmem>>, vector<1x16x128xf32>,
    %c2_299 = arith.constant 2 : index
    %c0_300 = arith.constant 0 : index
    %c0_301 = arith.constant 0 : index
    %257 = vector.load %arg3[%c2_299, %c0_300, %c0_301] : memref<3x16x128xbf16, #tpu.memory_space<vmem>>, vector<1x16x128xbf16>
    %258 = vector.shape_cast %257 : vector<1x16x128xbf16> to vector<16x128xbf16>
    %259 = arith.extf %258 : vector<16x128xbf16> to vector<16x128xf32>
    %260 = arith.mulf %242, %259 : vector<16x128xf32>
    %c2_302 = arith.constant 2 : index
    %c0_303 = arith.constant 0 : index
    %c0_304 = arith.constant 0 : index
    %261 = vector.load %arg4[%c2_302, %c0_303, %c0_304] : memref<3x16x128xf32, #tpu.memory_space<vmem>>, vector<1x16x128xf32>
    %262 = vector.shape_cast %261 : vector<1x16x128xf32> to vector<16x128xf32>
    %263 = vector.shape_cast %260 : vector<16x128xf32> to vector<1x16x128xf32>
    tpu.vector_store %arg4[%c2_302, %c0_303, %c0_304], %263 {strides = array<i32>} : memref<3x16x128xf32, #tpu.memory_space<vmem>>, vector<1x16x128xf32>,
    return
  }
  func.func @transform_0(%arg0: i32) -> (i32, i32, i32, i32, i32) {
    %c0_i32 = arith.constant 0 : i32
    %c0_i32_0 = arith.constant 0 : i32
    %c0_i32_1 = arith.constant 0 : i32
    %c0_i32_2 = arith.constant 0 : i32
    %c0_i32_3 = arith.constant 0 : i32
    return %c0_i32, %c0_i32_0, %c0_i32_1, %arg0, %c0_i32_2 : i32, i32, i32, i32, i32
  }
  func.func @transform_1(%arg0: i32) -> (i32, i32, i32) {
    %c0_i32 = arith.constant 0 : i32
    %c0_i32_0 = arith.constant 0 : i32
    %c0_i32_1 = arith.constant 0 : i32
    return %c0_i32, %arg0, %c0_i32_0 : i32, i32, i32
  }
  func.func @transform_2(%arg0: i32) -> (i32, i32, i32) {
    %c0_i32 = arith.constant 0 : i32
    %c0_i32_0 = arith.constant 0 : i32
    %c0_i32_1 = arith.constant 0 : i32
    return %c0_i32, %arg0, %c0_i32_0 : i32, i32, i32
  }
  func.func @transform_3(%arg0: i32) -> (i32, i32, i32) {
    %c0_i32 = arith.constant 0 : i32
    %c0_i32_0 = arith.constant 0 : i32
    %c0_i32_1 = arith.constant 0 : i32
    return %c0_i32, %arg0, %c0_i32_0 : i32, i32, i32
  }
}

</mosaic_0001>

<bundles_post_ra>
// kernel: tpu_custom_call.1
= control target key start
LH: loop header
LB: loop body
LE: loop exit
PB: predicated region body
PF: predicated region fallthrough
CT: control target
= control target key end

     0   :  { %8 = vsyncpa [#allocation3], 0  ;;  %s1185_s0 = inlined_call_operand.hbm [shape: f32[3,3,3,16,128], index: 0, kind: input, shape index: {}]   ;;  %s1186_s1 = inlined_call_operand.hbm [shape: f32[3,16,128], index: 1, kind: input, shape index: {}]   ;;  %s1187_s2 = inlined_call_operand.hbm [shape: bf16[3,16,128], index: 2, kind: input, shape index: {}]   ;;  %s1188_s3 = inlined_call_operand.hbm [shape: f32[3,16,128], index: 3, kind: output, shape index: {}]  }
   0x1   :  { %9 = vsyncpa [#allocation6], 0 }
   0x2   :  { %10 = vsyncpa [#allocation4], 0  ;;  %s682_s12 = smov [#allocation5]   ;;  %s683_s14 = smov [#allocation2]  }
   0x3   :  { %s28_s13 = sshll.u32 %s682_s12, 4  ;;  %s16_s15 = sshll.u32 %s683_s14, 4  ;;  %s29_s13 = int_to_ptr.vmem [resolvable:$true] %s28_s13  ;;  %s710_s15 = int_to_ptr.vmem [resolvable:$true] %s16_s15 }
   0x4   :  { %s588_s18 = scalar_lea.hbm %s1186_s1, 768 }
   0x5   :  { %p589_p0 = scmp.ne.s32.totalorder %s1186_s1, %s588_s18  ;;  %p592_p1 = scmp.lt.u32.totalorder %s588_s18, %s1186_s1 }
   0x7   :  { %p594_p2 = pnand %p592_p1, %p589_p0 }
   0x9   :  { %597 = shalt.err (!%p594_p2)
}
   0xa   :  { %s598_s23 = scalar_lea.vmem %s29_s13, 768  ;;  %p603_p4 = scmp.lt.s32.totalorder %s29_s13, %s29_s13 }
   0xb   :  { %p599_p3 = scmp.ne.s32.totalorder %s29_s13, %s598_s23  ;;  %p604_p5 = scmp.lt.s32.totalorder %s598_s23, %s598_s23 }
   0xd   :  { %p605_p6 = por %p604_p5, %p603_p4 }
   0xf   :  { %p606_p7 = pnand %p605_p6, %p599_p3 }
  0x11   :  { %609 = shalt.err (!%p606_p7)
}
  0x12   :  { %s684_s24 = smov 128   ;;  %s685_s25 = smov 8  }
  0x13   :  { %34 = dma.hbm_to_vmem [thread:$0]  %s1186_s1, 768, %s29_s13, [#allocation6], %s684_s24, %s684_s24, %s685_s25  }
  0x14   :  { %s610_s30 = scalar_lea.hbm %s1185_s0, 6912 }
  0x15   :  { %p611_p8 = scmp.ne.s32.totalorder %s1185_s0, %s610_s30  ;;  %p614_p9 = scmp.lt.u32.totalorder %s610_s30, %s1185_s0 }
  0x17   :  { %p616_p10 = pnand %p614_p9, %p611_p8 }
  0x19   :  { %619 = shalt.err (!%p616_p10)
}
  0x1a   :  { %s620_s8 = scalar_lea.vmem %s710_s15, 6912  ;;  %p625_p12 = scmp.lt.s32.totalorder %s710_s15, %s710_s15 }
  0x1b   :  { %p621_p11 = scmp.ne.s32.totalorder %s710_s15, %s620_s8  ;;  %p626_p13 = scmp.lt.s32.totalorder %s620_s8, %s620_s8 }
  0x1d   :  { %p627_p0 = por %p626_p13, %p625_p12 }
  0x1f   :  { %p628_p1 = pnand %p627_p0, %p621_p11 }
  0x21   :  { %631 = shalt.err (!%p628_p1)
}
  0x22   :  { %22 = dma.hbm_to_vmem [thread:$0]  %s1185_s0, 6912, %s710_s15, [#allocation3], %s684_s24, %s684_s24, %s685_s25  }
  0x23   :  { %s686_s10 = smov [#allocation7]   ;;  %s632_s14 = scalar_lea.hbm %s1187_s2, 384 }
  0x24   :  { %s40_s11 = sshll.u32 %s686_s10, 4  ;;  %p633_p2 = scmp.ne.s32.totalorder %s1187_s2, %s632_s14  ;;  %s41_s11 = int_to_ptr.vmem [resolvable:$true] %s40_s11 }
  0x25   :  { %p636_p3 = scmp.lt.u32.totalorder %s632_s14, %s1187_s2 }
  0x27   :  { %p638_p4 = pnand %p636_p3, %p633_p2 }
  0x29   :  { %641 = shalt.err (!%p638_p4)
}
  0x2a   :  { %s642_s20 = scalar_lea.vmem %s41_s11, 384  ;;  %p647_p6 = scmp.lt.s32.totalorder %s41_s11, %s41_s11 }
  0x2b   :  { %p643_p5 = scmp.ne.s32.totalorder %s41_s11, %s642_s20  ;;  %p648_p7 = scmp.lt.s32.totalorder %s642_s20, %s642_s20 }
  0x2d   :  { %p649_p8 = por %p648_p7, %p647_p6 }
  0x2f   :  { %p650_p9 = pnand %p649_p8, %p643_p5 }
  0x31   :  { %653 = shalt.err (!%p650_p9)
}
  0x32   :  { %s687_s0 = smov 64   ;;  %s688_s15 = smov 4  }
  0x33   :  { %46 = dma.hbm_to_vmem [thread:$0]  %s1187_s2, 384, %s41_s11, [#allocation6], %s687_s0, %s687_s0, %s688_s15  }
  0x34   :  { %676 = dma.done.wait [#allocation3], 6912  }
  0x35   :  { %677 = vsyncadd [#allocation3], 4294960384 }
  0x36   :  { %678 = dma.done.wait [#allocation6], 1152  }
  0x37   :  { %679 = vsyncadd [#allocation6], 4294966144  ;;  %v759_v0 = vld [vmem:[#allocation2] sm:$0xff]  ;;  %v761_v1 = vld [vmem:[#allocation2 + $0x30] sm:$0xff]  ;;  %s689_s2 = smov [#allocation8]  }
  0x38   :  { %v69_v2 = vsub.f32 %v759_v0, %v761_v1  ;;  %v765_v3 = vld [vmem:[#allocation2 + $0x10] sm:$0xff]  ;;  %v767_v4 = vld [vmem:[#allocation2 + $0x40] sm:$0xff]  ;;  %v815_v36 = vld [vmem:[#allocation2 + $0x8] sm:$0xff]  ;;  %s519_s23 = sshll.u32 %s689_s2, 4  ;;  %s520_s23 = int_to_ptr.vmem [resolvable:$true] %s519_s23 }
  0x39   :  { %v769_v5 = vld [vmem:[#allocation2 + $0x20] sm:$0xff]  ;;  %v77_v6 = vsub.f32 %v765_v3, %v767_v4  ;;  %v773_v7 = vld [vmem:[#allocation2 + $0x50] sm:$0xff]  ;;  %v817_v37 = vld [vmem:[#allocation2 + $0x38] sm:$0xff]  ;;  %s654_s26 = scalar_lea.vmem %s520_s23, 768  ;;  %p659_p11 = scmp.lt.s32.totalorder %s520_s23, %s520_s23 }
  0x3a   :  { %v775_v8 = vld [vmem:[#allocation2 + $0x90] sm:$0xff]  ;;  %v777_v9 = vld [vmem:[#allocation2 + $0xc0] sm:$0xff]  ;;  %v85_v10 = vsub.f32 %v769_v5, %v773_v7  ;;  %v87_v11 = vmul.f32 %v69_v2, %v69_v2  ;;  %v819_v38 = vld [vmem:[#allocation2 + $0x18] sm:$0xff]  ;;  %v70_v42 = vsub.f32 %v815_v36, %v817_v37  ;;  %p655_p10 = scmp.ne.s32.totalorder %s520_s23, %s654_s26  ;;  %p660_p12 = scmp.lt.s32.totalorder %s654_s26, %s654_s26 }
  0x3b   :  { %v210_v12 = vsub.f32 %v775_v8, %v777_v9  ;;  %v783_v13 = vld [vmem:[#allocation2 + $0xa0] sm:$0xff]  ;;  %v785_v14 = vld [vmem:[#allocation2 + $0xd0] sm:$0xff]  ;;  %v89_v16 = vmul.f32 %v77_v6, %v77_v6  ;;  %v825_v43 = vld [vmem:[#allocation2 + $0x48] sm:$0xff] }
  0x3c   :  { %v787_v15 = vld [vmem:[#allocation2 + $0xb0] sm:$0xff]  ;;  %v218_v17 = vsub.f32 %v783_v13, %v785_v14  ;;  %v791_v18 = vld [vmem:[#allocation2 + $0xe0] sm:$0xff]  ;;  %v93_v21 = vmul.f32 %v85_v10, %v85_v10  ;;  %v827_v44 = vld [vmem:[#allocation2 + $0x28] sm:$0xff]  ;;  %v78_v46 = vsub.f32 %v819_v38, %v825_v43  ;;  %v88_v58 = vmul.f32 %v70_v42, %v70_v42  ;;  %p661_p13 = por %p660_p12, %p659_p11 }
  0x3d   :  { %v793_v19 = vld [vmem:[#allocation2 + $0x120] sm:$0xff]  ;;  %v795_v20 = vld [vmem:[#allocation2 + $0x150] sm:$0xff]  ;;  %v226_v22 = vsub.f32 %v787_v15, %v791_v18  ;;  %v228_v23 = vmul.f32 %v210_v12, %v210_v12  ;;  %v91_v28 = vadd.f32 %v89_v16, %v87_v11  ;;  %v829_v45 = vld [vmem:[#allocation2 + $0x58] sm:$0xff] }
  0x3e   :  { %v351_v24 = vsub.f32 %v793_v19, %v795_v20  ;;  %v801_v25 = vld [vmem:[#allocation2 + $0x130] sm:$0xff]  ;;  %v803_v26 = vld [vmem:[#allocation2 + $0x160] sm:$0xff]  ;;  %v230_v29 = vmul.f32 %v218_v17, %v218_v17  ;;  %v86_v47 = vsub.f32 %v827_v44, %v829_v45  ;;  %v835_v48 = vld [vmem:[#allocation2 + $0x98] sm:$0xff]  ;;  %v90_v59 = vmul.f32 %v78_v46, %v78_v46  ;;  %p662_p0 = pnand %p661_p13, %p655_p10 }
  0x3f   :  { %v805_v27 = vld [vmem:[#allocation2 + $0x140] sm:$0xff]  ;;  %v359_v30 = vsub.f32 %v801_v25, %v803_v26  ;;  %v809_v31 = vld [vmem:[#allocation2 + $0x170] sm:$0xff]  ;;  %v234_v33 = vmul.f32 %v226_v22, %v226_v22  ;;  %v821_v39 = vadd.f32 %v93_v21, %v91_v28  ;;  %v837_v49 = vld [vmem:[#allocation2 + $0xc8] sm:$0xff] }
  0x40   :  { %v811_v32 = vld [vmem:[#allocation7] sm:$0xff]   ;;  %v367_v34 = vsub.f32 %v805_v27, %v809_v31  ;;  %v369_v35 = vmul.f32 %v351_v24, %v351_v24  ;;  %v232_v40 = vadd.f32 %v230_v29, %v228_v23  ;;  %v839_v50 = vld [vmem:[#allocation2 + $0xa8] sm:$0xff]  ;;  %v843_v53 = vld [vmem:[#allocation2 + $0xd8] sm:$0xff]  ;;  %v211_v63 = vsub.f32 %v835_v48, %v837_v49 }
  0x41   :  { %v371_v41 = vmul.f32 %v359_v30, %v359_v30  ;;  %552 = vrsqrt.f32 %v821_v39  ;;  %v845_v54 = vld [vmem:[#allocation2 + $0xb8] sm:$0xff]  ;;  %v847_v55 = vld [vmem:[#allocation2 + $0xe8] sm:$0xff]  ;;  %v219_v2 = vsub.f32 %v839_v50, %v843_v53  ;;  %vm99_vm0 = vcmp.eq.f32.partialorder %v821_v39, inf  ;;  %v902_v16 = vld [vmem:[#allocation2 + $0x100] sm:$0xff] }
  0x42   :  { %v375_v51 = vmul.f32 %v367_v34, %v367_v34  ;;  %v849_v56 = vadd.f32 %v234_v33, %v232_v40  ;;  %v851_v60 = vld [vmem:[#allocation2 + $0x128] sm:$0xff]  ;;  %v853_v61 = vld [vmem:[#allocation2 + $0x158] sm:$0xff]  ;;  %v227_v6 = vsub.f32 %v845_v54, %v847_v55  ;;  %vm101_vm1 = vcmp.eq.f32.partialorder %v821_v39, 0.0  ;;  %v882_v34 = vld [vmem:[#allocation2 + $0x60] sm:$0xff] }
  0x43   :  { %v373_v57 = vadd.f32 %v371_v41, %v369_v35  ;;  %1192 = vst [vmem:[#allocation12_spill] sm:$0xff] %v853_v61  ;;  %v855_v62 = vld [vmem:[#allocation2 + $0x138] sm:$0xff]  ;;  %v863_v10 = vld [vmem:[#allocation2 + $0x168] sm:$0xff]  ;;  %v94_v17 = vmul.f32 %v86_v47, %v86_v47  ;;  %v92_v22 = vadd.f32 %v90_v59, %v88_v58  ;;  %v229_v23 = vmul.f32 %v211_v63, %v211_v63  ;;  %v884_v35 = vld [vmem:[#allocation2 + $0x70] sm:$0xff] }
  0x44   :  { %1193 = vst [vmem:[#allocation13_spill] sm:$0xff] %v863_v10  ;;  %v865_v11 = vld [vmem:[#allocation2 + $0x148] sm:$0xff]  ;;  %v867_v12 = vld [vmem:[#allocation2 + $0x178] sm:$0xff]  ;;  %554 = vrsqrt.f32 %v849_v56  ;;  %v231_v24 = vmul.f32 %v219_v2, %v219_v2  ;;  %v102_v28 = vand.u32 2147483648, %v821_v39  ;;  %v352_v29 = vsub.f32 %v851_v60, %v853_v61  ;;  %v886_v40 = vld [vmem:[#allocation2 + $0x80] sm:$0xff] }
  0x45   :  { %1194 = vst [vmem:[#allocation14_spill] sm:$0xff] %v867_v12  ;;  %v873_v21 = vadd.f32 %v375_v51, %v373_v57  ;;  %v360_v30 = vsub.f32 %v855_v62, %v863_v10  ;;  %v368_v33 = vsub.f32 %v865_v11, %v867_v12  ;;  %vm240_vm2 = vcmp.eq.f32.partialorder %v849_v56, inf  ;;  %v900_v2 = vld [vmem:[#allocation2 + $0xf0] sm:$0xff] }
  0x46   :  { %vm242_vm3 = vcmp.eq.f32.partialorder %v849_v56, 0.0  ;;  %v235_v41 = vmul.f32 %v227_v6, %v227_v6  ;;  %v891_v42 = vadd.f32 %v94_v17, %v92_v22  ;;  %v233_v46 = vadd.f32 %v231_v24, %v229_v23  ;;  %v909_v24 = vld [vmem:[#allocation2 + $0x110] sm:$0xff] }
  0x47   :  { %556 = vrsqrt.f32 %v873_v21  ;;  %v370_v47 = vmul.f32 %v352_v29, %v352_v29  ;;  %v372_v51 = vmul.f32 %v360_v30, %v360_v30  ;;  %v243_v57 = vand.u32 2147483648, %v849_v56  ;;  %v56_v12 = vld [vmem:[#allocation5] sm:$0xff] }
  0x48   :  { %v122_v58 = vsub.f32 %v759_v0, %v882_v34  ;;  %v127_v59 = vsub.f32 %v765_v3, %v884_v35  ;;  %v132_v63 = vsub.f32 %v769_v5, %v886_v40  ;;  %vm381_vm4 = vcmp.eq.f32.partialorder %v873_v21, inf }
  0x49   :  { %vm383_vm5 = vcmp.eq.f32.partialorder %v873_v21, 0.0  ;;  %558 = vrsqrt.f32 %v891_v42  ;;  %v376_v6 = vmul.f32 %v368_v33, %v368_v33  ;;  %v907_v22 = vadd.f32 %v235_v41, %v233_v46 }
  0x4a   :  { %v374_v0 = vadd.f32 %v372_v51, %v370_v47  ;;  %v134_v23 = vmul.f32 %v122_v58, %v122_v58  ;;  %v136_v3 = vmul.f32 %v127_v59, %v127_v59  ;;  %v384_v29 = vand.u32 2147483648, %v873_v21 }
  0x4b   :  { %v553_v17 = vpop.eup %552  ;;  %v263_v30 = vsub.f32 %v775_v8, %v900_v2  ;;  %v268_v52 = vsub.f32 %v783_v13, %v902_v16  ;;  %vm106_vm6 = vcmp.eq.f32.partialorder %v891_v42, inf  ;;  %vm108_vm7 = vcmp.eq.f32.partialorder %v891_v42, 0.0 }
  0x4c   :  { %v98_v5 = vmul.f32 %v553_v17, %v821_v39  ;;  %560 = vrsqrt.f32 %v907_v22  ;;  %v140_v33 = vmul.f32 %v132_v63, %v132_v63  ;;  %v923_v47 = vadd.f32 %v376_v6, %v374_v0 }
  0x4d   :  { %v138_v51 = vadd.f32 %v136_v3, %v134_v23  ;;  %v273_v8 = vsub.f32 %v787_v15, %v909_v24  ;;  %v275_v59 = vmul.f32 %v263_v30, %v263_v30  ;;  %v277_v17 = vmul.f32 %v268_v52, %v268_v52 }
  0x4e   :  { %v555_v41 = vpop.eup %554  ;;  %v100_v46 = vsel %vm99_vm0, %v821_v39, %v98_v5  ;;  %v109_v63 = vand.u32 2147483648, %v891_v42  ;;  %vm247_vm8 = vcmp.eq.f32.partialorder %v907_v22, inf  ;;  %562 = vrsqrt.f32 %v923_v47  ;;  %v942_v5 = vld [vmem:[#allocation2 + $0x180] sm:$0xff] }
  0x4f   :  { %v103_v13 = vsel %vm101_vm1, %v102_v28, %v100_v46  ;;  %v239_v58 = vmul.f32 %v555_v41, %v849_v56  ;;  %vm249_vm9 = vcmp.eq.f32.partialorder %v907_v22, 0.0  ;;  %v937_v15 = vadd.f32 %v140_v33, %v138_v51 }
  0x50   :  { %v111_v10 = vsub.f32 %v103_v13, %v56_v12  ;;  %v279_v39 = vadd.f32 %v277_v17, %v275_v59  ;;  %v281_v3 = vmul.f32 %v273_v8, %v273_v8  ;;  %v250_v41 = vand.u32 2147483648, %v907_v22  ;;  %v960_v59 = vld [vmem:[#allocation2 + $0x1a0] sm:$0xff] }
  0x51   :  { %v557_v6 = vpop.eup %556  ;;  %v241_v0 = vsel %vm240_vm2, %v849_v56, %v239_v58  ;;  %vm388_vm10 = vcmp.eq.f32.partialorder %v923_v47, inf  ;;  %564 = vrsqrt.f32 %v937_v15  ;;  %vm390_vm11 = vcmp.eq.f32.partialorder %v923_v47, 0.0 }
  0x52   :  { %v113_v28 = vand.u32 2147483647, %v111_v10  ;;  %v244_v52 = vsel %vm242_vm3, %v243_v57, %v241_v0  ;;  %v380_v23 = vmul.f32 %v557_v6, %v873_v21  ;;  %v951_v56 = vadd.f32 %v281_v3, %v279_v39  ;;  %v953_v57 = vld [vmem:[#allocation2 + $0x190] sm:$0xff]  ;;  %v57_v6 = vld [vmem:[#allocation5 + $0x8] sm:$0xff] }
  0x53   :  { %v252_v30 = vsub.f32 %v244_v52, %v56_v12  ;;  %v559_v46 = vpop.eup %558  ;;  %v404_v58 = vsub.f32 %v793_v19, %v942_v5  ;;  %v391_v0 = vand.u32 2147483648, %v923_v47  ;;  %vm146_vm12 = vcmp.eq.f32.partialorder %v937_v15, inf }
  0x54   :  { %v115_v33 = vmul.f32 0.26229507, %v113_v28  ;;  %v382_v10 = vsel %vm381_vm4, %v873_v21, %v380_v23  ;;  %v105_v13 = vmul.f32 %v559_v46, %v891_v42  ;;  %566 = vrsqrt.f32 %v951_v56 }
  0x55   :  { %v254_v51 = vand.u32 2147483647, %v252_v30  ;;  %v385_v8 = vsel %vm383_vm5, %v384_v29, %v382_v10  ;;  %vm148_vm13 = vcmp.eq.f32.partialorder %v937_v15, 0.0  ;;  %v409_v19 = vsub.f32 %v801_v25, %v953_v57 }
  0x56   :  { %v393_v17 = vsub.f32 %v385_v8, %v56_v12  ;;  %v561_v39 = vpop.eup %560  ;;  %v107_v21 = vsel %vm106_vm6, %v891_v42, %v105_v13  ;;  %v414_v23 = vsub.f32 %v805_v27, %v960_v59  ;;  %v416_v46 = vmul.f32 %v404_v58, %v404_v58  ;;  %v978_v8 = vld [vmem:[#allocation2 + $0x78] sm:$0xff] }
  0x57   :  { %v256_v28 = vmul.f32 0.32786885, %v254_v51  ;;  %v110_v12 = vsel %vm108_vm7, %v109_v63, %v107_v21  ;;  %v246_v52 = vmul.f32 %v561_v39, %v907_v22  ;;  %v418_v10 = vmul.f32 %v409_v19, %v409_v19  ;;  %v976_v51 = vld [vmem:[#allocation2 + $0x68] sm:$0xff] }
  0x58   :  { %v395_v29 = vand.u32 2147483647, %v393_v17  ;;  %v112_v30 = vsub.f32 %v110_v12, %v57_v6  ;;  %v563_v13 = vpop.eup %562  ;;  %v149_v42 = vand.u32 2147483648, %v937_v15  ;;  %v422_v63 = vmul.f32 %v414_v23, %v414_v23  ;;  %v984_v17 = vld [vmem:[#allocation2 + $0x88] sm:$0xff] }
  0x59   :  { %v258_v3 = vadd.f32 %v256_v28, %v115_v33  ;;  %v248_v25 = vsel %vm247_vm8, %v907_v22, %v246_v52  ;;  %v387_v58 = vmul.f32 %v563_v13, %v923_v47  ;;  %v420_v39 = vadd.f32 %v418_v10, %v416_v46  ;;  %v1005_v10 = vld [vmem:[#allocation5 + $0x10] sm:$0xff]  ;;  %v1010_v13 = vld [vmem:[#allocation2 + $0xf8] sm:$0xff] }
  0x5a   :  { %v397_v61 = vmul.f32 0.40983605, %v395_v29  ;;  %v114_v27 = vand.u32 2147483647, %v112_v30  ;;  %v251_v33 = vsel %vm249_vm9, %v250_v41, %v248_v25  ;;  %v123_v19 = vsub.f32 %v815_v36, %v976_v51 }
  0x5b   :  { %v253_v21 = vsub.f32 %v251_v33, %v57_v6  ;;  %v128_v29 = vsub.f32 %v819_v38, %v978_v8  ;;  %v565_v12 = vpop.eup %564  ;;  %v389_v23 = vsel %vm388_vm10, %v923_v47, %v387_v58  ;;  %v996_v30 = vadd.f32 %v422_v63, %v420_v39  ;;  %v1016_v63 = vld [vmem:[#allocation2 + $0x108] sm:$0xff] }
  0x5c   :  { %v399_v28 = vadd.f32 %v397_v61, %v258_v3  ;;  %v116_v52 = vmul.f32 0.26229507, %v114_v27  ;;  %v133_v22 = vsub.f32 %v827_v44, %v984_v17  ;;  %v1195_v61 = vunpack.c.l.bf16 %v811_v32 }
  0x5d   :  { %v255_v3 = vand.u32 2147483647, %v253_v21  ;;  %v392_v36 = vsel %vm390_vm11, %v391_v0, %v389_v23  ;;  %v145_v38 = vmul.f32 %v565_v12, %v937_v15  ;;  %vm287_vm14 = vcmp.eq.f32.partialorder %v951_v56, inf }
  0x5e   :  { %v490_v41 = vmul.f32 %v1195_v61, %v399_v28  ;;  %v394_v46 = vsub.f32 %v392_v36, %v57_v6  ;;  %vm289_vm15 = vcmp.eq.f32.partialorder %v951_v56, 0.0  ;;  %568 = vrsqrt.f32 %v996_v30  ;;  %v567_v44 = vpop.eup %566  ;;  %v1021_v28 = vld [vmem:[#allocation2 + $0x118] sm:$0xff] }
  0x5f   :  { %v257_v25 = vmul.f32 0.32786885, %v255_v3  ;;  %v147_v47 = vsel %vm146_vm12, %v937_v15, %v145_v38  ;;  %v290_v0 = vand.u32 2147483648, %v951_v56  ;;  %v135_v6 = vmul.f32 %v123_v19, %v123_v19 }
  0x60   :  { %492 = vst [vmem:[#allocation8] sm:$0xff] %v490_v41  ;;  %v396_v27 = vand.u32 2147483647, %v394_v46  ;;  %v150_v33 = vsel %vm148_vm13, %v149_v42, %v147_v47  ;;  %v286_v58 = vmul.f32 %v567_v44, %v951_v56  ;;  %v137_v39 = vmul.f32 %v128_v29, %v128_v29  ;;  %v1031_v42 = vld [vmem:[#allocation2 + $0x188] sm:$0xff]  ;;  %v1033_v29 = vld [vmem:[#allocation2 + $0x198] sm:$0xff] }
  0x61   :  { %v259_v21 = vadd.f32 %v257_v25, %v116_v52  ;;  %v158_v12 = vsub.f32 %v150_v33, %v1005_v10  ;;  %v141_v23 = vmul.f32 %v133_v22, %v133_v22  ;;  %v264_v61 = vsub.f32 %v835_v48, %v1010_v13  ;;  %v1042_v47 = vld [vmem:[#allocation2 + $0x1a8] sm:$0xff] }
  0x62   :  { %v398_v41 = vmul.f32 0.40983605, %v396_v27  ;;  %v288_v19 = vsel %vm287_vm14, %v951_v56, %v286_v58  ;;  %v139_v3 = vadd.f32 %v137_v39, %v135_v6  ;;  %v269_v15 = vsub.f32 %v839_v50, %v1016_v63 }
  0x63   :  { %v160_v52 = vand.u32 2147483647, %v158_v12  ;;  %v291_v22 = vsel %vm289_vm15, %v290_v0, %v288_v19  ;;  %v274_v48 = vsub.f32 %v845_v54, %v1021_v28  ;;  %v276_v36 = vmul.f32 %v264_v61, %v264_v61 }
  0x64   :  { %v400_v38 = vadd.f32 %v398_v41, %v259_v21  ;;  %v299_v46 = vsub.f32 %v291_v22, %v1005_v10  ;;  %v1040_v44 = vadd.f32 %v141_v23, %v139_v3  ;;  %v278_v25 = vmul.f32 %v269_v15, %v269_v15 }
  0x65   :  { %v282_v50 = vmul.f32 %v274_v48, %v274_v48  ;;  %v405_v6 = vsub.f32 %v851_v60, %v1031_v42  ;;  %v410_v56 = vsub.f32 %v855_v62, %v1033_v29  ;;  %v1196_v0 = vunpack.c.h.bf16 %v811_v32  ;;  %v1056_v62 = vld [vmem:[#allocation7 + $0x8] sm:$0xff]  }
  0x66   :  { %v301_v54 = vand.u32 2147483647, %v299_v46  ;;  %570 = vrsqrt.f32 %v1040_v44  ;;  %vm428_vm0 = vcmp.eq.f32.partialorder %v996_v30, inf  ;;  %vm430_vm1 = vcmp.eq.f32.partialorder %v996_v30, 0.0 }
  0x67   :  { %v491_v27 = vmul.f32 %v1196_v0, %v400_v38  ;;  %v280_v33 = vadd.f32 %v278_v25, %v276_v36  ;;  %v415_v58 = vsub.f32 %v865_v11, %v1042_v47  ;;  %v162_v60 = vmul.f32 0.26229507, %v160_v52 }
  0x68   :  { %v569_v39 = vpop.eup %568  ;;  %v431_v21 = vand.u32 2147483648, %v996_v30  ;;  %v417_v32 = vmul.f32 %v405_v6, %v405_v6  ;;  %v419_v12 = vmul.f32 %v410_v56, %v410_v56  ;;  %v166_v19 = vsub.f32 %v761_v1, %v882_v34 }
  0x69   :  { %493 = vst [vmem:[#allocation8 + $0x8] sm:$0xff] %v491_v27  ;;  %v427_v23 = vmul.f32 %v569_v39, %v996_v30  ;;  %v1059_v61 = vadd.f32 %v282_v50, %v280_v33  ;;  %v423_v41 = vmul.f32 %v415_v58, %v415_v58  ;;  %v303_v3 = vmul.f32 0.32786885, %v301_v54 }
  0x6a   :  { %v421_v15 = vadd.f32 %v419_v12, %v417_v32  ;;  %v168_v11 = vsub.f32 %v767_v4, %v884_v35  ;;  %v170_v52 = vsub.f32 %v773_v7, %v886_v40  ;;  %v538_v48 = vunpack.c.l.bf16 %v1056_v62 }
  0x6b   :  { %v429_v22 = vsel %vm428_vm0, %v996_v30, %v427_v23  ;;  %572 = vrsqrt.f32 %v1059_v61  ;;  %vm153_vm2 = vcmp.eq.f32.partialorder %v1040_v44, inf  ;;  %v172_v34 = vmul.f32 %v166_v19, %v166_v19 }
  0x6c   :  { %v432_v36 = vsel %vm430_vm1, %v431_v21, %v429_v22  ;;  %v1075_v1 = vadd.f32 %v423_v41, %v421_v15  ;;  %v174_v35 = vmul.f32 %v168_v11, %v168_v11  ;;  %v178_v7 = vmul.f32 %v170_v52, %v170_v52 }
  0x6d   :  { %v440_v4 = vsub.f32 %v432_v36, %v1005_v10  ;;  %v307_v40 = vsub.f32 %v777_v9, %v900_v2  ;;  %v305_v38 = vadd.f32 %v303_v3, %v162_v60  ;;  %vm155_vm3 = vcmp.eq.f32.partialorder %v1040_v44, 0.0 }
  0x6e   :  { %v156_v46 = vand.u32 2147483648, %v1040_v44  ;;  %574 = vrsqrt.f32 %v1075_v1  ;;  %v176_v25 = vadd.f32 %v174_v35, %v172_v34  ;;  %v309_v50 = vsub.f32 %v785_v14, %v902_v16  ;;  %v60_v16 = vld [vmem:[#allocation5 + $0x18] sm:$0xff] }
  0x6f   :  { %v442_v30 = vand.u32 2147483647, %v440_v4  ;;  %v311_v10 = vsub.f32 %v791_v18, %v909_v24  ;;  %v313_v56 = vmul.f32 %v307_v40, %v307_v40  ;;  %v448_v9 = vsub.f32 %v795_v20, %v942_v5 }
  0x70   :  { %v571_v6 = vpop.eup %570  ;;  %v450_v2 = vsub.f32 %v803_v26, %v953_v57  ;;  %v452_v0 = vsub.f32 %v809_v31, %v960_v59  ;;  %v1094_v33 = vadd.f32 %v178_v7, %v176_v25  ;;  %v315_v14 = vmul.f32 %v309_v50, %v309_v50 }
  0x71   :  { %v444_v27 = vmul.f32 0.40983605, %v442_v30  ;;  %v152_v54 = vmul.f32 %v571_v6, %v1040_v44  ;;  %v539_v18 = vunpack.c.h.bf16 %v1056_v62  ;;  %v319_v24 = vmul.f32 %v311_v10, %v311_v10  ;;  %v1197_v6 = vld [vmem:[#allocation12_spill] sm:$0xff] }
  0x72   :  { %v454_v58 = vmul.f32 %v448_v9, %v448_v9  ;;  %v456_v39 = vmul.f32 %v450_v2, %v450_v2  ;;  %576 = vrsqrt.f32 %v1094_v33  ;;  %v460_v26 = vmul.f32 %v452_v0, %v452_v0  ;;  %v62_v9 = vld [vmem:[#allocation5 + $0x20] sm:$0xff] }
  0x73   :  { %v446_v60 = vadd.f32 %v444_v27, %v305_v38  ;;  %v154_v20 = vsel %vm153_vm2, %v1040_v44, %v152_v54  ;;  %vm294_vm4 = vcmp.eq.f32.partialorder %v1059_v61, inf  ;;  %vm296_vm5 = vcmp.eq.f32.partialorder %v1059_v61, 0.0 }
  0x74   :  { %v157_v31 = vsel %vm155_vm3, %v156_v46, %v154_v20  ;;  %v317_v5 = vadd.f32 %v315_v14, %v313_v56  ;;  %v297_v32 = vand.u32 2147483648, %v1059_v61  ;;  %v458_v12 = vadd.f32 %v456_v39, %v454_v58  ;;  %v1199_v58 = vld [vmem:[#allocation14_spill] sm:$0xff] }
  0x75   :  { %v573_v57 = vpop.eup %572  ;;  %v499_v59 = vmul.f32 %v538_v48, %v446_v60  ;;  %v159_v21 = vsub.f32 %v157_v31, %v60_v16  ;;  %vm435_vm6 = vcmp.eq.f32.partialorder %v1075_v1, inf  ;;  %vm437_vm7 = vcmp.eq.f32.partialorder %v1075_v1, 0.0 }
  0x76   :  { %v293_v23 = vmul.f32 %v573_v57, %v1059_v61  ;;  %v1109_v41 = vadd.f32 %v319_v24, %v317_v5  ;;  %v1111_v19 = vadd.f32 %v460_v26, %v458_v12  ;;  %v167_v3 = vsub.f32 %v817_v37, %v976_v51 }
  0x77   :  { %502 = vst [vmem:[#allocation8 + $0x10] sm:$0xff] %v499_v59  ;;  %v161_v44 = vand.u32 2147483647, %v159_v21  ;;  %v169_v15 = vsub.f32 %v825_v43, %v978_v8  ;;  %v438_v22 = vand.u32 2147483648, %v1075_v1  ;;  %v171_v48 = vsub.f32 %v829_v45, %v984_v17 }
  0x78   :  { %v575_v11 = vpop.eup %574  ;;  %v295_v52 = vsel %vm294_vm4, %v1059_v61, %v293_v23  ;;  %578 = vrsqrt.f32 %v1109_v41  ;;  %vm184_vm8 = vcmp.eq.f32.partialorder %v1094_v33, inf  ;;  %v308_v43 = vsub.f32 %v837_v49, %v1010_v13 }
  0x79   :  { %v298_v36 = vsel %vm296_vm5, %v297_v32, %v295_v52  ;;  %v434_v37 = vmul.f32 %v575_v11, %v1075_v1  ;;  %vm186_vm9 = vcmp.eq.f32.partialorder %v1094_v33, 0.0  ;;  %v187_v8 = vand.u32 2147483648, %v1094_v33 }
  0x7a   :  { %v300_v51 = vsub.f32 %v298_v36, %v60_v16  ;;  %580 = vrsqrt.f32 %v1111_v19  ;;  %v163_v34 = vmul.f32 0.26229507, %v161_v44  ;;  %v173_v17 = vmul.f32 %v167_v3, %v167_v3 }
  0x7b   :  { %v436_v45 = vsel %vm435_vm6, %v1075_v1, %v434_v37  ;;  %v175_v61 = vmul.f32 %v169_v15, %v169_v15  ;;  %v179_v7 = vmul.f32 %v171_v48, %v171_v48  ;;  %v310_v49 = vsub.f32 %v843_v53, %v1016_v63  ;;  %v1198_v53 = vld [vmem:[#allocation13_spill] sm:$0xff] }
  0x7c   :  { %v302_v4 = vand.u32 2147483647, %v300_v51  ;;  %v439_v35 = vsel %vm437_vm7, %v438_v22, %v436_v45  ;;  %v577_v13 = vpop.eup %576  ;;  %v312_v46 = vsub.f32 %v847_v55, %v1021_v28  ;;  %v314_v30 = vmul.f32 %v308_v43, %v308_v43  ;;  %v541_v22 = vld [vmem:[#allocation7 + $0x10] sm:$0xff]   ;;  %v63_v45 = vld [vmem:[#allocation5 + $0x28] sm:$0xff] }
  0x7d   :  { %v441_v40 = vsub.f32 %v439_v35, %v60_v16  ;;  %v177_v38 = vadd.f32 %v175_v61, %v173_v17  ;;  %v183_v50 = vmul.f32 %v577_v13, %v1094_v33  ;;  %v316_v10 = vmul.f32 %v310_v49, %v310_v49 }
  0x7e   :  { %v304_v25 = vmul.f32 0.32786885, %v302_v4  ;;  %v449_v56 = vsub.f32 %v1197_v6, %v1031_v42  ;;  %v320_v0 = vmul.f32 %v312_v46, %v312_v46  ;;  %v451_v63 = vsub.f32 %v1198_v53, %v1033_v29 }
  0x7f   :  { %v443_v1 = vand.u32 2147483647, %v441_v40  ;;  %v181_v2 = vadd.f32 %v179_v7, %v177_v38  ;;  %v185_v55 = vsel %vm184_vm8, %v1094_v33, %v183_v50  ;;  %vm325_vm10 = vcmp.eq.f32.partialorder %v1109_v41, inf }
  0x80   :  { %v306_v27 = vadd.f32 %v304_v25, %v163_v34  ;;  %v318_v28 = vadd.f32 %v316_v10, %v314_v30  ;;  %v188_v14 = vsel %vm186_vm9, %v187_v8, %v185_v55  ;;  %vm327_vm11 = vcmp.eq.f32.partialorder %v1109_v41, 0.0 }
  0x81   :  { %v445_v54 = vmul.f32 0.40983605, %v443_v1  ;;  %582 = vrsqrt.f32 %v181_v2  ;;  %v196_v16 = vsub.f32 %v188_v14, %v62_v9  ;;  %v328_v24 = vand.u32 2147483648, %v1109_v41 }
  0x82   :  { %v579_v42 = vpop.eup %578  ;;  %v322_v29 = vadd.f32 %v320_v0, %v318_v28  ;;  %v453_v39 = vsub.f32 %v1199_v58, %v1042_v47  ;;  %v455_v26 = vmul.f32 %v449_v56, %v449_v56  ;;  %v457_v31 = vmul.f32 %v451_v63, %v451_v63 }
  0x83   :  { %v447_v60 = vadd.f32 %v445_v54, %v306_v27  ;;  %v324_v20 = vmul.f32 %v579_v42, %v1109_v41  ;;  %vm466_vm12 = vcmp.eq.f32.partialorder %v1111_v19, inf  ;;  %vm468_vm13 = vcmp.eq.f32.partialorder %v1111_v19, 0.0 }
  0x84   :  { %v581_v5 = vpop.eup %580  ;;  %v469_v33 = vand.u32 2147483648, %v1111_v19  ;;  %584 = vrsqrt.f32 %v322_v29  ;;  %v198_v59 = vand.u32 2147483647, %v196_v16  ;;  %v459_v12 = vadd.f32 %v457_v31, %v455_v26 }
  0x85   :  { %v500_v57 = vmul.f32 %v539_v18, %v447_v60  ;;  %v326_v47 = vsel %vm325_vm10, %v1109_v41, %v324_v20  ;;  %v465_v21 = vmul.f32 %v581_v5, %v1111_v19  ;;  %v461_v23 = vmul.f32 %v453_v39, %v453_v39 }
  0x86   :  { %v329_v32 = vsel %vm327_vm11, %v328_v24, %v326_v47  ;;  %v200_v62 = vmul.f32 0.26229507, %v198_v59  ;;  %vm191_vm14 = vcmp.eq.f32.partialorder %v181_v2, inf  ;;  %v194_v43 = vand.u32 2147483648, %v181_v2 }
  0x87   :  { %503 = vst [vmem:[#allocation8 + $0x18] sm:$0xff] %v500_v57  ;;  %v337_v44 = vsub.f32 %v329_v32, %v62_v9  ;;  %v467_v3 = vsel %vm466_vm12, %v1111_v19, %v465_v21  ;;  %v463_v11 = vadd.f32 %v461_v23, %v459_v12  ;;  %vm193_vm15 = vcmp.eq.f32.partialorder %v181_v2, 0.0 }
  0x88   :  { %v470_v15 = vsel %vm468_vm13, %v469_v33, %v467_v3  ;;  %v542_v34 = vunpack.c.l.bf16 %v541_v22  ;;  %vm332_vm0 = vcmp.eq.f32.partialorder %v322_v29, inf  ;;  %v335_v61 = vand.u32 2147483648, %v322_v29 }
  0x89   :  { %v339_v18 = vand.u32 2147483647, %v337_v44  ;;  %v478_v52 = vsub.f32 %v470_v15, %v62_v9  ;;  %586 = vrsqrt.f32 %v463_v11  ;;  %vm334_vm1 = vcmp.eq.f32.partialorder %v322_v29, 0.0 }
  0x8a   :  { %vm473_vm2 = vcmp.eq.f32.partialorder %v463_v11, inf  ;;  %v476_v50 = vand.u32 2147483648, %v463_v11  ;;  %vm475_vm3 = vcmp.eq.f32.partialorder %v463_v11, 0.0  ;;  %v543_v55 = vunpack.c.h.bf16 %v541_v22 }
  0x8b   :  { %v583_v48 = vpop.eup %582  ;;  %v341_v36 = vmul.f32 0.32786885, %v339_v18  ;;  %v480_v37 = vand.u32 2147483647, %v478_v52 }
  0x8c   :  { %v190_v41 = vmul.f32 %v583_v48, %v181_v2 }
  0x8d   :  { %v343_v51 = vadd.f32 %v341_v36, %v200_v62  ;;  %v482_v8 = vmul.f32 0.40983605, %v480_v37 }
  0x8e   :  { %v585_v17 = vpop.eup %584  ;;  %v192_v19 = vsel %vm191_vm14, %v181_v2, %v190_v41 }
  0x8f   :  { %v484_v4 = vadd.f32 %v482_v8, %v343_v51  ;;  %v195_v35 = vsel %vm193_vm15, %v194_v43, %v192_v19  ;;  %v331_v7 = vmul.f32 %v585_v17, %v322_v29 }
  0x90   :  { %v197_v49 = vsub.f32 %v195_v35, %v63_v45 }
  0x91   :  { %v509_v13 = vmul.f32 %v542_v34, %v484_v4  ;;  %v333_v40 = vsel %vm332_vm0, %v322_v29, %v331_v7 }
  0x92   :  { %v336_v38 = vsel %vm334_vm1, %v335_v61, %v333_v40  ;;  %v199_v46 = vand.u32 2147483647, %v197_v49 }
  0x93   :  { %512 = vst [vmem:[#allocation8 + $0x20] sm:$0xff] %v509_v13  ;;  %v338_v30 = vsub.f32 %v336_v38, %v63_v45  ;;  %v587_v25 = vpop.eup %586 }
  0x94   :  { %v472_v6 = vmul.f32 %v587_v25, %v463_v11  ;;  %v201_v56 = vmul.f32 0.26229507, %v199_v46 }
  0x95   :  { %v340_v10 = vand.u32 2147483647, %v338_v30 }
  0x96   :  { %v474_v9 = vsel %vm473_vm2, %v463_v11, %v472_v6 }
  0x97   :  { %v342_v1 = vmul.f32 0.32786885, %v340_v10  ;;  %v477_v2 = vsel %vm475_vm3, %v476_v50, %v474_v9 }
  0x98   :  { %v479_v0 = vsub.f32 %v477_v2, %v63_v45 }
  0x99   :  { %v344_v53 = vadd.f32 %v342_v1, %v201_v56 }
  0x9a   :  { %v481_v63 = vand.u32 2147483647, %v479_v0 }
  0x9c   :  { %v483_v27 = vmul.f32 0.40983605, %v481_v63 }
  0x9e   :  { %v485_v28 = vadd.f32 %v483_v27, %v344_v53 }
  0xa0   :  { %v510_v54 = vmul.f32 %v543_v55, %v485_v28 }
  0xa2   :  { %513 = vst [vmem:[#allocation8 + $0x28] sm:$0xff] %v510_v54 }
  0xa3   :  { %665 = shalt.err (!%p662_p0)
}
  0xa4   :  { %s666_s29 = scalar_lea.hbm %s1188_s3, 768 }
  0xa5   :  { %p667_p1 = scmp.ne.s32.totalorder %s1188_s3, %s666_s29  ;;  %p670_p2 = scmp.lt.u32.totalorder %s666_s29, %s1188_s3 }
  0xa7   :  { %p672_p3 = pnand %p670_p2, %p667_p1 }
  0xa9   :  { %675 = shalt.err (!%p672_p3)
}
  0xaa   :  { %525 = dma.vmem_to_hbm [thread:$0]  %s520_s23, 768, %s1188_s3, [#allocation4], %s684_s24, %s684_s24, %s685_s25  }
  0xab   :  { %680 = dma.done.wait [#allocation4], 768  }
  0xac   :  { %681 = vsyncadd [#allocation4], 4294966528 }
  0xad   :  { %529 = vsyncpa [#allocation3], 1 }
  0xae   :  { %530 = vsyncpa [#allocation6], 1 }
  0xaf   :  { %531 = vsyncpa [#allocation4], 1 }

</bundles_post_ra>
